<compile_context>
chip_gen: v5e
topology: v5e:2x2
jax: 0.10.0
libtpu: 0.0.40
codegen_flags: <defaults>
</compile_context>

<pallas_src>
import jax
import jax.numpy as jnp
from jax.experimental import pallas as pl
from jax.experimental.pallas import tpu as pltpu

LEAK = 0.01     # nn.LeakyReLU default negative_slope
LANE = 128      # TPU lane width
MAX_TILE_B = 512


def _round_up(x, m):
    return -(-x // m) * m


def _cdiv(a, b):
    return -(-a // b)


def _leaky_relu(x):
    return jnp.where(x > 0, x, LEAK * x)


def _linear(x, w_ref, b_ref):
    # Weights live in VMEM as bf16; cast the activation at the MXU input only,
    # accumulate in f32, add f32 bias (b stored as (1, out), broadcasts).
    return jnp.dot(x.astype(jnp.bfloat16), w_ref[...],
                   preferred_element_type=jnp.float32) + b_ref[...]


def vae_kernel(x_ref, noise_ref,
               we1_w, we1_b, we2_w, we2_b, we3_w, we3_b,
               wh_w, wh_b,                      # fused, packed [mu | logvar] head
               wd1_w, wd1_b, wd2_w, wd2_b, wd3_w, wd3_b,
               wf1_w, wf1_b, wf2_w, wf2_b,
               pred_ref, stats_ref):
    half = stats_ref.shape[1] // 2              # packed half-width (64 lanes)
    x = x_ref[...]

    # ---- encoder: Linear + LeakyReLU x3 (layer sizes reversed: 64, 32, 32) ----
    h = _leaky_relu(_linear(x, we1_w, we1_b))
    h = _leaky_relu(_linear(h, we2_w, we2_b))
    h = _leaky_relu(_linear(h, we3_w, we3_b))

    # ---- fused latent head: one matmul -> packed [mu | logvar] (tb, 2*half) ----
    stats = _linear(h, wh_w, wh_b)              # f32

    # Rotate by `half` lanes so logvar lands on lanes [0, half) aligned with mu
    # (XLU rotate, free slot in this mem-bound kernel).  Lanes >= latent hold
    # zeros / finite leftovers that are killed by the zero rows of wd1_w.
    logvar_al = pltpu.roll(stats, shift=half, axis=1)

    # ---- reparameterization: randn_like(mu) * exp(0.5 * logvar) + mu ----
    z = noise_ref[...].astype(jnp.float32) * jnp.exp(0.5 * logvar_al) + stats

    # ---- decoder: Linear + LeakyReLU x3 (layer sizes: 32, 32, 64) ----
    d = _leaky_relu(_linear(z, wd1_w, wd1_b))
    d = _leaky_relu(_linear(d, wd2_w, wd2_b))
    d = _leaky_relu(_linear(d, wd3_w, wd3_b))

    # ---- f head: Linear -> LeakyReLU -> Linear ----
    f = _leaky_relu(_linear(d, wf1_w, wf1_b))
    pred_ref[...] = _linear(f, wf2_w, wf2_b).astype(pred_ref.dtype)   # bf16 store
    stats_ref[...] = stats


def init_params(key, in_features, latent_dim, layer_size=(32, 32, 64)):
    """Deterministic synthetic parameters (PyTorch-style uniform fan-in init).

    Returns (W, b) pairs in the order:
      enc1, enc2, enc3, mu, var, dec1, dec2, dec3, f1, f2
    with W of shape (in, out) and b of shape (1, out), f32.
    """
    layer_size = list(layer_size)
    enc_dims = [in_features] + list(reversed(layer_size))   # 1024->64->32->32
    dec_dims = [latent_dim] + layer_size                     # 8->32->32->64
    enc_out, dec_out = enc_dims[-1], dec_dims[-1]

    shapes = (
        [(enc_dims[i], enc_dims[i + 1]) for i in range(len(enc_dims) - 1)]
        + [(enc_out, latent_dim), (enc_out, latent_dim)]     # mu, var
        + [(dec_dims[i], dec_dims[i + 1]) for i in range(len(dec_dims) - 1)]
        + [(dec_out, dec_out), (dec_out, in_features)]       # f
    )

    params = []
    for (fan_in, fan_out) in shapes:
        key, kw, kb = jax.random.split(key, 3)
        bound = 1.0 / jnp.sqrt(fan_in)
        w = jax.random.uniform(kw, (fan_in, fan_out), jnp.float32, -bound, bound)
        b = jax.random.uniform(kb, (1, fan_out), jnp.float32, -bound, bound)
        params.append((w, b))
    return params


def _pack_params(params, f_pad, h_pad, half):
    """Zero-pad to lane-dense shapes, fuse + pack the mu/var head into a single
    2*half-lane block, and cast weights to bf16.

    Returns a flat list: [W, b, W, b, ...] in kernel order (9 layers)."""
    def pad(w, b, rin, cout):
        wp = jnp.pad(w, ((0, rin - w.shape[0]), (0, cout - w.shape[1])))
        bp = jnp.pad(b, ((0, 0), (0, cout - b.shape[1])))
        return wp.astype(jnp.bfloat16), bp.astype(jnp.float32)

    (we1, be1), (we2, be2), (we3, be3), (wmu, bmu), (wvar, bvar), \
        (wd1, bd1), (wd2, bd2), (wd3, bd3), (wf1, bf1), (wf2, bf2) = params

    z_w = 2 * half
    out = []
    out += pad(we1, be1, f_pad, h_pad)
    out += pad(we2, be2, h_pad, h_pad)
    out += pad(we3, be3, h_pad, h_pad)
    # packed [mu | logvar] head: (h_pad, 2*half), each head padded to `half`
    wmu_p, bmu_p = pad(wmu, bmu, h_pad, half)
    wvar_p, bvar_p = pad(wvar, bvar, h_pad, half)
    out += [jnp.concatenate([wmu_p, wvar_p], axis=1),
            jnp.concatenate([bmu_p, bvar_p], axis=1)]
    out += pad(wd1, bd1, z_w, h_pad)     # zero rows >= latent kill packed leftovers
    out += pad(wd2, bd2, h_pad, h_pad)
    out += pad(wd3, bd3, h_pad, h_pad)
    out += pad(wf1, bf1, h_pad, h_pad)
    out += pad(wf2, bf2, h_pad, f_pad)
    return out


def _choose_batch_tile(B):
    """Pick (tile_b, b_pad): >=2 grid steps when possible (v7x megacore), an
    even step count, tile capped at MAX_TILE_B, minimal batch padding."""
    if B <= 8:
        t = _round_up(B, 8)
        return t, t
    n = max(2, _cdiv(B, MAX_TILE_B))
    if n % 2:
        n += 1
    tile_b = _round_up(_cdiv(B, n), 8)
    return tile_b, tile_b * n


@jax.jit
def vae_forward(x, noise, params):
    """x: (B, C, H, W) or (B, F), f32 or bf16; noise: (B, latent) f32 ~ N(0,1).

    Returns (pred (B, F) bf16, mu (B, latent) f32, logvar (B, latent) f32)."""
    x_flat = x.reshape(x.shape[0], -1)           # torch.flatten(x, start_dim=1)
    B, F = x_flat.shape
    latent = noise.shape[1]

    f_pad = _round_up(F, LANE)
    hidden_dims = [params[i][0].shape[1] for i in (0, 1, 2, 5, 6, 7, 8)]
    h_pad = _round_up(max(hidden_dims), LANE)
    half = 64 if latent <= 64 else _round_up(latent, LANE)   # packed head half-width
    z_w = 2 * half

    tile_b, b_pad = _choose_batch_tile(B)

    # bf16 activation I/O: cast is fused with the zero-pad (no extra HBM pass);
    # if the producer already emits bf16 the cast is a no-op.
    x_p = jnp.pad(x_flat.astype(jnp.bfloat16), ((0, b_pad - B), (0, f_pad - F)))
    n_p = jnp.pad(noise.astype(jnp.bfloat16), ((0, b_pad - B), (0, z_w - latent)))
    flat = _pack_params(params, f_pad, h_pad, half)

    def const_spec(a):
        # VMEM-resident weights/biases: constant block index across the grid.
        return pl.BlockSpec(a.shape, lambda i: (0, 0))

    in_specs = [
        pl.BlockSpec((tile_b, f_pad), lambda i: (i, 0)),
        pl.BlockSpec((tile_b, z_w), lambda i: (i, 0)),
    ] + [const_spec(a) for a in flat]
    out_specs = (
        pl.BlockSpec((tile_b, f_pad), lambda i: (i, 0)),
        pl.BlockSpec((tile_b, z_w), lambda i: (i, 0)),
    )
    out_shape = (
        jax.ShapeDtypeStruct((b_pad, f_pad), jnp.bfloat16),    # pred (padded, bf16)
        jax.ShapeDtypeStruct((b_pad, z_w), jnp.float32),       # packed [mu | logvar]
    )

    flops = 2 * b_pad * sum(int(w.shape[0]) * int(w.shape[1]) for w in flat[0::2])
    bytes_accessed = (
        sum(int(a.size) * a.dtype.itemsize for a in flat)
        + int(x_p.size) * 2 + int(n_p.size) * 2
        + b_pad * f_pad * 2 + b_pad * z_w * 4
    )

    pred_p, stats_p = pl.pallas_call(
        vae_kernel,
        grid=(b_pad // tile_b,),
        out_shape=out_shape,
        in_specs=in_specs,
        out_specs=out_specs,
        compiler_params=pltpu.CompilerParams(
            dimension_semantics=("parallel",)),           # v7x: shard over 2 TCs
        cost_estimate=pl.CostEstimate(
            flops=flops, transcendentals=b_pad * z_w,
            bytes_accessed=bytes_accessed),
    )(x_p, n_p, *flat)

    pred = pred_p[:B, :F]
    mu = stats_p[:B, :latent]
    logvar = stats_p[:B, half:half + latent]
    return pred, mu, logvar


def vae_forward_ref(x, noise, params):
    """Pure-JAX reference mirroring kernel numerics (bf16 matmul inputs,
    bf16-rounded noise, f32 accumulation/elementwise), on unpadded f32 params."""
    x_flat = x.reshape(x.shape[0], -1)

    def lin(h, wb):
        w, b = wb
        return jnp.dot(h.astype(jnp.bfloat16), w.astype(jnp.bfloat16),
                       preferred_element_type=jnp.float32) + b

    h = x_flat
    for wb in params[0:3]:
        h = _leaky_relu(lin(h, wb))
    mu = lin(h, params[3])
    logvar = lin(h, params[4])
    eps = noise.astype(jnp.bfloat16).astype(jnp.float32)   # kernel gets bf16 noise
    z = eps * jnp.exp(0.5 * logvar) + mu
    d = z
    for wb in params[5:8]:
        d = _leaky_relu(lin(d, wb))
    f = _leaky_relu(lin(d, params[8]))
    pred = lin(f, params[9])
    return pred, mu, logvar


if __name__ == "__main__":
    # Shapes implied by forward: any (B, C, H, W) input is flattened, so
    # in_features = C*H*W. Pick B=2, C=4, H=W=16 -> in_features=1024, latent=8.
    B, C, H, W = 2, 4, 16, 16
    in_features = C * H * W
    latent_dim = 8

    key = jax.random.PRNGKey(0)
    k_x, k_noise, k_params = jax.random.split(key, 3)

    x = jax.random.normal(k_x, (B, C, H, W), jnp.float32)
    # TODO(synk): torch.randn_like RNG cannot be reproduced bit-for-bit; the
    # standard-normal noise is generated deterministically outside the kernel.
    noise = jax.random.normal(k_noise, (B, latent_dim), jnp.float32)
    params = init_params(k_params, in_features, latent_dim)

    pred, mu, logvar = vae_forward(x, noise, params)
    jax.block_until_ready((pred, mu, logvar))

    assert pred.shape == (B, in_features)
    assert mu.shape == (B, latent_dim) and logvar.shape == (B, latent_dim)

    # correctness check against the pure-JAX reference
    pred_r, mu_r, logvar_r = vae_forward_ref(x, noise, params)
    assert jnp.allclose(mu, mu_r, atol=2e-3, rtol=2e-3)
    assert jnp.allclose(logvar, logvar_r, atol=2e-3, rtol=2e-3)
    # pred is stored bf16 in the kernel -> looser tolerance
    assert jnp.allclose(pred.astype(jnp.float32), pred_r, atol=2e-2, rtol=2e-2)

    print("KERNEL_OK")
</pallas_src>

<mosaic_0001>
module attributes {stable_mosaic.version = 11 : i64} {
  func.func @vae_kernel(%arg0: i32, %arg1: memref<8x1024xbf16, #tpu.memory_space<vmem>>, %arg2: memref<8x128xbf16, #tpu.memory_space<vmem>>, %arg3: memref<1024x128xbf16, #tpu.memory_space<vmem>>, %arg4: memref<1x128xf32, #tpu.memory_space<vmem>>, %arg5: memref<128x128xbf16, #tpu.memory_space<vmem>>, %arg6: memref<1x128xf32, #tpu.memory_space<vmem>>, %arg7: memref<128x128xbf16, #tpu.memory_space<vmem>>, %arg8: memref<1x128xf32, #tpu.memory_space<vmem>>, %arg9: memref<128x128xbf16, #tpu.memory_space<vmem>>, %arg10: memref<1x128xf32, #tpu.memory_space<vmem>>, %arg11: memref<128x128xbf16, #tpu.memory_space<vmem>>, %arg12: memref<1x128xf32, #tpu.memory_space<vmem>>, %arg13: memref<128x128xbf16, #tpu.memory_space<vmem>>, %arg14: memref<1x128xf32, #tpu.memory_space<vmem>>, %arg15: memref<128x128xbf16, #tpu.memory_space<vmem>>, %arg16: memref<1x128xf32, #tpu.memory_space<vmem>>, %arg17: memref<128x128xbf16, #tpu.memory_space<vmem>>, %arg18: memref<1x128xf32, #tpu.memory_space<vmem>>, %arg19: memref<128x1024xbf16, #tpu.memory_space<vmem>>, %arg20: memref<1x1024xf32, #tpu.memory_space<vmem>>, %arg21: memref<8x1024xbf16, #tpu.memory_space<vmem>>, %arg22: memref<8x128xf32, #tpu.memory_space<vmem>>) attributes {dimension_semantics = [#tpu.dimension_semantics<parallel>], iteration_bounds = array<i64: 1>, scalar_prefetch = 0 : i64, scratch_operands = 0 : i64, tpu.core_type = #tpu.core_type<tc>, window_params = [{transform_indices = @transform_0, window_bounds = array<i64: 8, 1024>}, {transform_indices = @transform_1, window_bounds = array<i64: 8, 128>}, {pipeline_mode = #tpu.pipeline_mode<synchronous>, transform_indices = @transform_2, window_bounds = array<i64: 1024, 128>}, {pipeline_mode = #tpu.pipeline_mode<synchronous>, transform_indices = @transform_3, window_bounds = array<i64: 1, 128>}, {pipeline_mode = #tpu.pipeline_mode<synchronous>, transform_indices = @transform_4, window_bounds = array<i64: 128, 128>}, {pipeline_mode = #tpu.pipeline_mode<synchronous>, transform_indices = @transform_5, window_bounds = array<i64: 1, 128>}, {pipeline_mode = #tpu.pipeline_mode<synchronous>, transform_indices = @transform_6, window_bounds = array<i64: 128, 128>}, {pipeline_mode = #tpu.pipeline_mode<synchronous>, transform_indices = @transform_7, window_bounds = array<i64: 1, 128>}, {pipeline_mode = #tpu.pipeline_mode<synchronous>, transform_indices = @transform_8, window_bounds = array<i64: 128, 128>}, {pipeline_mode = #tpu.pipeline_mode<synchronous>, transform_indices = @transform_9, window_bounds = array<i64: 1, 128>}, {pipeline_mode = #tpu.pipeline_mode<synchronous>, transform_indices = @transform_10, window_bounds = array<i64: 128, 128>}, {pipeline_mode = #tpu.pipeline_mode<synchronous>, transform_indices = @transform_11, window_bounds = array<i64: 1, 128>}, {pipeline_mode = #tpu.pipeline_mode<synchronous>, transform_indices = @transform_12, window_bounds = array<i64: 128, 128>}, {pipeline_mode = #tpu.pipeline_mode<synchronous>, transform_indices = @transform_13, window_bounds = array<i64: 1, 128>}, {pipeline_mode = #tpu.pipeline_mode<synchronous>, transform_indices = @transform_14, window_bounds = array<i64: 128, 128>}, {pipeline_mode = #tpu.pipeline_mode<synchronous>, transform_indices = @transform_15, window_bounds = array<i64: 1, 128>}, {pipeline_mode = #tpu.pipeline_mode<synchronous>, transform_indices = @transform_16, window_bounds = array<i64: 128, 128>}, {pipeline_mode = #tpu.pipeline_mode<synchronous>, transform_indices = @transform_17, window_bounds = array<i64: 1, 128>}, {pipeline_mode = #tpu.pipeline_mode<synchronous>, transform_indices = @transform_18, window_bounds = array<i64: 128, 1024>}, {pipeline_mode = #tpu.pipeline_mode<synchronous>, transform_indices = @transform_19, window_bounds = array<i64: 1, 1024>}, {transform_indices = @transform_20, window_bounds = array<i64: 8, 1024>}, {transform_indices = @transform_21, window_bounds = array<i64: 8, 128>}]} {
    %c0 = arith.constant 0 : index
    %c0_0 = arith.constant 0 : index
    %0 = vector.load %arg1[%c0, %c0_0] : memref<8x1024xbf16, #tpu.memory_space<vmem>>, vector<8x1024xbf16>
    %c0_1 = arith.constant 0 : index
    %c0_2 = arith.constant 0 : index
    %1 = vector.load %arg3[%c0_1, %c0_2] : memref<1024x128xbf16, #tpu.memory_space<vmem>>, vector<1024x128xbf16>
    %cst = arith.constant dense<0.000000e+00> : vector<8x128xf32>
    %2 = tpu.matmul %0, %1, %cst {dimension_numbers = #tpu.dot_dimension_numbers<[1], [0], [0], [1], [0, 0, 1, 1], [], []>} : vector<8x1024xbf16>, vector<1024x128xbf16>, vector<8x128xf32> -> vector<8x128xf32>
    %c0_3 = arith.constant 0 : index
    %c0_4 = arith.constant 0 : index
    %3 = vector.load %arg4[%c0_3, %c0_4] : memref<1x128xf32, #tpu.memory_space<vmem>>, vector<1x128xf32>
    %4 = vector.broadcast %3 : vector<1x128xf32> to vector<8x128xf32>
    %5 = arith.addf %2, %4 : vector<8x128xf32>
    %cst_5 = arith.constant 0.000000e+00 : f32
    %6 = vector.broadcast %cst_5 : f32 to vector<8x128xf32>
    %7 = arith.cmpf ogt, %5, %6 : vector<8x128xf32>
    %cst_6 = arith.constant 0.00999999977 : f32
    %8 = vector.broadcast %cst_6 : f32 to vector<8x128xf32>
    %9 = arith.mulf %8, %5 : vector<8x128xf32>
    %10 = arith.select %7, %5, %9 : vector<8x128xi1>, vector<8x128xf32>
    %11 = arith.truncf %10 : vector<8x128xf32> to vector<8x128xbf16>
    %c0_7 = arith.constant 0 : index
    %c0_8 = arith.constant 0 : index
    %12 = vector.load %arg5[%c0_7, %c0_8] : memref<128x128xbf16, #tpu.memory_space<vmem>>, vector<128x128xbf16>
    %cst_9 = arith.constant dense<0.000000e+00> : vector<8x128xf32>
    %13 = tpu.matmul %11, %12, %cst_9 {dimension_numbers = #tpu.dot_dimension_numbers<[1], [0], [0], [1], [0, 0, 1, 1], [], []>} : vector<8x128xbf16>, vector<128x128xbf16>, vector<8x128xf32> -> vector<8x128xf32>
    %c0_10 = arith.constant 0 : index
    %c0_11 = arith.constant 0 : index
    %14 = vector.load %arg6[%c0_10, %c0_11] : memref<1x128xf32, #tpu.memory_space<vmem>>, vector<1x128xf32>
    %15 = vector.broadcast %14 : vector<1x128xf32> to vector<8x128xf32>
    %16 = arith.addf %13, %15 : vector<8x128xf32>
    %cst_12 = arith.constant 0.000000e+00 : f32
    %17 = vector.broadcast %cst_12 : f32 to vector<8x128xf32>
    %18 = arith.cmpf ogt, %16, %17 : vector<8x128xf32>
    %cst_13 = arith.constant 0.00999999977 : f32
    %19 = vector.broadcast %cst_13 : f32 to vector<8x128xf32>
    %20 = arith.mulf %19, %16 : vector<8x128xf32>
    %21 = arith.select %18, %16, %20 : vector<8x128xi1>, vector<8x128xf32>
    %22 = arith.truncf %21 : vector<8x128xf32> to vector<8x128xbf16>
    %c0_14 = arith.constant 0 : index
    %c0_15 = arith.constant 0 : index
    %23 = vector.load %arg7[%c0_14, %c0_15] : memref<128x128xbf16, #tpu.memory_space<vmem>>, vector<128x128xbf16>
    %cst_16 = arith.constant dense<0.000000e+00> : vector<8x128xf32>
    %24 = tpu.matmul %22, %23, %cst_16 {dimension_numbers = #tpu.dot_dimension_numbers<[1], [0], [0], [1], [0, 0, 1, 1], [], []>} : vector<8x128xbf16>, vector<128x128xbf16>, vector<8x128xf32> -> vector<8x128xf32>
    %c0_17 = arith.constant 0 : index
    %c0_18 = arith.constant 0 : index
    %25 = vector.load %arg8[%c0_17, %c0_18] : memref<1x128xf32, #tpu.memory_space<vmem>>, vector<1x128xf32>
    %26 = vector.broadcast %25 : vector<1x128xf32> to vector<8x128xf32>
    %27 = arith.addf %24, %26 : vector<8x128xf32>
    %cst_19 = arith.constant 0.000000e+00 : f32
    %28 = vector.broadcast %cst_19 : f32 to vector<8x128xf32>
    %29 = arith.cmpf ogt, %27, %28 : vector<8x128xf32>
    %cst_20 = arith.constant 0.00999999977 : f32
    %30 = vector.broadcast %cst_20 : f32 to vector<8x128xf32>
    %31 = arith.mulf %30, %27 : vector<8x128xf32>
    %32 = arith.select %29, %27, %31 : vector<8x128xi1>, vector<8x128xf32>
    %33 = arith.truncf %32 : vector<8x128xf32> to vector<8x128xbf16>
    %c0_21 = arith.constant 0 : index
    %c0_22 = arith.constant 0 : index
    %34 = vector.load %arg9[%c0_21, %c0_22] : memref<128x128xbf16, #tpu.memory_space<vmem>>, vector<128x128xbf16>
    %cst_23 = arith.constant dense<0.000000e+00> : vector<8x128xf32>
    %35 = tpu.matmul %33, %34, %cst_23 {dimension_numbers = #tpu.dot_dimension_numbers<[1], [0], [0], [1], [0, 0, 1, 1], [], []>} : vector<8x128xbf16>, vector<128x128xbf16>, vector<8x128xf32> -> vector<8x128xf32>
    %c0_24 = arith.constant 0 : index
    %c0_25 = arith.constant 0 : index
    %36 = vector.load %arg10[%c0_24, %c0_25] : memref<1x128xf32, #tpu.memory_space<vmem>>, vector<1x128xf32>
    %37 = vector.broadcast %36 : vector<1x128xf32> to vector<8x128xf32>
    %38 = arith.addf %35, %37 : vector<8x128xf32>
    %c64_i32 = arith.constant 64 : i32
    %39 = tpu.dynamic_rotate %38 by %c64_i32 dim 1 : vector<8x128xf32>, i32 -> vector<8x128xf32>
    %c0_26 = arith.constant 0 : index
    %c0_27 = arith.constant 0 : index
    %40 = vector.load %arg2[%c0_26, %c0_27] : memref<8x128xbf16, #tpu.memory_space<vmem>>, vector<8x128xbf16>
    %41 = arith.extf %40 : vector<8x128xbf16> to vector<8x128xf32>
    %cst_28 = arith.constant 5.000000e-01 : f32
    %42 = vector.broadcast %cst_28 : f32 to vector<8x128xf32>
    %43 = arith.mulf %42, %39 : vector<8x128xf32>
    %44 = math.exp %43 : vector<8x128xf32>
    %45 = arith.mulf %41, %44 : vector<8x128xf32>
    %46 = arith.addf %45, %38 : vector<8x128xf32>
    %47 = arith.truncf %46 : vector<8x128xf32> to vector<8x128xbf16>
    %c0_29 = arith.constant 0 : index
    %c0_30 = arith.constant 0 : index
    %48 = vector.load %arg11[%c0_29, %c0_30] : memref<128x128xbf16, #tpu.memory_space<vmem>>, vector<128x128xbf16>
    %cst_31 = arith.constant dense<0.000000e+00> : vector<8x128xf32>
    %49 = tpu.matmul %47, %48, %cst_31 {dimension_numbers = #tpu.dot_dimension_numbers<[1], [0], [0], [1], [0, 0, 1, 1], [], []>} : vector<8x128xbf16>, vector<128x128xbf16>, vector<8x128xf32> -> vector<8x128xf32>
    %c0_32 = arith.constant 0 : index
    %c0_33 = arith.constant 0 : index
    %50 = vector.load %arg12[%c0_32, %c0_33] : memref<1x128xf32, #tpu.memory_space<vmem>>, vector<1x128xf32>
    %51 = vector.broadcast %50 : vector<1x128xf32> to vector<8x128xf32>
    %52 = arith.addf %49, %51 : vector<8x128xf32>
    %cst_34 = arith.constant 0.000000e+00 : f32
    %53 = vector.broadcast %cst_34 : f32 to vector<8x128xf32>
    %54 = arith.cmpf ogt, %52, %53 : vector<8x128xf32>
    %cst_35 = arith.constant 0.00999999977 : f32
    %55 = vector.broadcast %cst_35 : f32 to vector<8x128xf32>
    %56 = arith.mulf %55, %52 : vector<8x128xf32>
    %57 = arith.select %54, %52, %56 : vector<8x128xi1>, vector<8x128xf32>
    %58 = arith.truncf %57 : vector<8x128xf32> to vector<8x128xbf16>
    %c0_36 = arith.constant 0 : index
    %c0_37 = arith.constant 0 : index
    %59 = vector.load %arg13[%c0_36, %c0_37] : memref<128x128xbf16, #tpu.memory_space<vmem>>, vector<128x128xbf16>
    %cst_38 = arith.constant dense<0.000000e+00> : vector<8x128xf32>
    %60 = tpu.matmul %58, %59, %cst_38 {dimension_numbers = #tpu.dot_dimension_numbers<[1], [0], [0], [1], [0, 0, 1, 1], [], []>} : vector<8x128xbf16>, vector<128x128xbf16>, vector<8x128xf32> -> vector<8x128xf32>
    %c0_39 = arith.constant 0 : index
    %c0_40 = arith.constant 0 : index
    %61 = vector.load %arg14[%c0_39, %c0_40] : memref<1x128xf32, #tpu.memory_space<vmem>>, vector<1x128xf32>
    %62 = vector.broadcast %61 : vector<1x128xf32> to vector<8x128xf32>
    %63 = arith.addf %60, %62 : vector<8x128xf32>
    %cst_41 = arith.constant 0.000000e+00 : f32
    %64 = vector.broadcast %cst_41 : f32 to vector<8x128xf32>
    %65 = arith.cmpf ogt, %63, %64 : vector<8x128xf32>
    %cst_42 = arith.constant 0.00999999977 : f32
    %66 = vector.broadcast %cst_42 : f32 to vector<8x128xf32>
    %67 = arith.mulf %66, %63 : vector<8x128xf32>
    %68 = arith.select %65, %63, %67 : vector<8x128xi1>, vector<8x128xf32>
    %69 = arith.truncf %68 : vector<8x128xf32> to vector<8x128xbf16>
    %c0_43 = arith.constant 0 : index
    %c0_44 = arith.constant 0 : index
    %70 = vector.load %arg15[%c0_43, %c0_44] : memref<128x128xbf16, #tpu.memory_space<vmem>>, vector<128x128xbf16>
    %cst_45 = arith.constant dense<0.000000e+00> : vector<8x128xf32>
    %71 = tpu.matmul %69, %70, %cst_45 {dimension_numbers = #tpu.dot_dimension_numbers<[1], [0], [0], [1], [0, 0, 1, 1], [], []>} : vector<8x128xbf16>, vector<128x128xbf16>, vector<8x128xf32> -> vector<8x128xf32>
    %c0_46 = arith.constant 0 : index
    %c0_47 = arith.constant 0 : index
    %72 = vector.load %arg16[%c0_46, %c0_47] : memref<1x128xf32, #tpu.memory_space<vmem>>, vector<1x128xf32>
    %73 = vector.broadcast %72 : vector<1x128xf32> to vector<8x128xf32>
    %74 = arith.addf %71, %73 : vector<8x128xf32>
    %cst_48 = arith.constant 0.000000e+00 : f32
    %75 = vector.broadcast %cst_48 : f32 to vector<8x128xf32>
    %76 = arith.cmpf ogt, %74, %75 : vector<8x128xf32>
    %cst_49 = arith.constant 0.00999999977 : f32
    %77 = vector.broadcast %cst_49 : f32 to vector<8x128xf32>
    %78 = arith.mulf %77, %74 : vector<8x128xf32>
    %79 = arith.select %76, %74, %78 : vector<8x128xi1>, vector<8x128xf32>
    %80 = arith.truncf %79 : vector<8x128xf32> to vector<8x128xbf16>
    %c0_50 = arith.constant 0 : index
    %c0_51 = arith.constant 0 : index
    %81 = vector.load %arg17[%c0_50, %c0_51] : memref<128x128xbf16, #tpu.memory_space<vmem>>, vector<128x128xbf16>
    %cst_52 = arith.constant dense<0.000000e+00> : vector<8x128xf32>
    %82 = tpu.matmul %80, %81, %cst_52 {dimension_numbers = #tpu.dot_dimension_numbers<[1], [0], [0], [1], [0, 0, 1, 1], [], []>} : vector<8x128xbf16>, vector<128x128xbf16>, vector<8x128xf32> -> vector<8x128xf32>
    %c0_53 = arith.constant 0 : index
    %c0_54 = arith.constant 0 : index
    %83 = vector.load %arg18[%c0_53, %c0_54] : memref<1x128xf32, #tpu.memory_space<vmem>>, vector<1x128xf32>
    %84 = vector.broadcast %83 : vector<1x128xf32> to vector<8x128xf32>
    %85 = arith.addf %82, %84 : vector<8x128xf32>
    %cst_55 = arith.constant 0.000000e+00 : f32
    %86 = vector.broadcast %cst_55 : f32 to vector<8x128xf32>
    %87 = arith.cmpf ogt, %85, %86 : vector<8x128xf32>
    %cst_56 = arith.constant 0.00999999977 : f32
    %88 = vector.broadcast %cst_56 : f32 to vector<8x128xf32>
    %89 = arith.mulf %88, %85 : vector<8x128xf32>
    %90 = arith.select %87, %85, %89 : vector<8x128xi1>, vector<8x128xf32>
    %91 = arith.truncf %90 : vector<8x128xf32> to vector<8x128xbf16>
    %c0_57 = arith.constant 0 : index
    %c0_58 = arith.constant 0 : index
    %92 = vector.load %arg19[%c0_57, %c0_58] : memref<128x1024xbf16, #tpu.memory_space<vmem>>, vector<128x1024xbf16>
    %cst_59 = arith.constant dense<0.000000e+00> : vector<8x1024xf32>
    %93 = tpu.matmul %91, %92, %cst_59 {dimension_numbers = #tpu.dot_dimension_numbers<[1], [0], [0], [1], [0, 0, 1, 1], [], []>} : vector<8x128xbf16>, vector<128x1024xbf16>, vector<8x1024xf32> -> vector<8x1024xf32>
    %c0_60 = arith.constant 0 : index
    %c0_61 = arith.constant 0 : index
    %94 = vector.load %arg20[%c0_60, %c0_61] : memref<1x1024xf32, #tpu.memory_space<vmem>>, vector<1x1024xf32>
    %95 = vector.broadcast %94 : vector<1x1024xf32> to vector<8x1024xf32>
    %96 = arith.addf %93, %95 : vector<8x1024xf32>
    %97 = arith.truncf %96 : vector<8x1024xf32> to vector<8x1024xbf16>
    %c0_62 = arith.constant 0 : index
    %c0_63 = arith.constant 0 : index
    %98 = vector.load %arg21[%c0_62, %c0_63] : memref<8x1024xbf16, #tpu.memory_space<vmem>>, vector<8x1024xbf16>
    tpu.vector_store %arg21[%c0_62, %c0_63], %97 {strides = array<i32>} : memref<8x1024xbf16, #tpu.memory_space<vmem>>, vector<8x1024xbf16>,
    %c0_64 = arith.constant 0 : index
    %c0_65 = arith.constant 0 : index
    %99 = vector.load %arg22[%c0_64, %c0_65] : memref<8x128xf32, #tpu.memory_space<vmem>>, vector<8x128xf32>
    tpu.vector_store %arg22[%c0_64, %c0_65], %38 {strides = array<i32>} : memref<8x128xf32, #tpu.memory_space<vmem>>, vector<8x128xf32>,
    return
  }
  func.func @transform_0(%arg0: i32) -> (i32, i32) {
    %c0_i32 = arith.constant 0 : i32
    %c0_i32_0 = arith.constant 0 : i32
    return %arg0, %c0_i32 : i32, i32
  }
  func.func @transform_1(%arg0: i32) -> (i32, i32) {
    %c0_i32 = arith.constant 0 : i32
    %c0_i32_0 = arith.constant 0 : i32
    return %arg0, %c0_i32 : i32, i32
  }
  func.func @transform_2(%arg0: i32) -> (i32, i32) {
    %c0_i32 = arith.constant 0 : i32
    %c0_i32_0 = arith.constant 0 : i32
    %c0_i32_1 = arith.constant 0 : i32
    return %c0_i32, %c0_i32_0 : i32, i32
  }
  func.func @transform_3(%arg0: i32) -> (i32, i32) {
    %c0_i32 = arith.constant 0 : i32
    %c0_i32_0 = arith.constant 0 : i32
    %c0_i32_1 = arith.constant 0 : i32
    return %c0_i32, %c0_i32_0 : i32, i32
  }
  func.func @transform_4(%arg0: i32) -> (i32, i32) {
    %c0_i32 = arith.constant 0 : i32
    %c0_i32_0 = arith.constant 0 : i32
    %c0_i32_1 = arith.constant 0 : i32
    return %c0_i32, %c0_i32_0 : i32, i32
  }
  func.func @transform_5(%arg0: i32) -> (i32, i32) {
    %c0_i32 = arith.constant 0 : i32
    %c0_i32_0 = arith.constant 0 : i32
    %c0_i32_1 = arith.constant 0 : i32
    return %c0_i32, %c0_i32_0 : i32, i32
  }
  func.func @transform_6(%arg0: i32) -> (i32, i32) {
    %c0_i32 = arith.constant 0 : i32
    %c0_i32_0 = arith.constant 0 : i32
    %c0_i32_1 = arith.constant 0 : i32
    return %c0_i32, %c0_i32_0 : i32, i32
  }
  func.func @transform_7(%arg0: i32) -> (i32, i32) {
    %c0_i32 = arith.constant 0 : i32
    %c0_i32_0 = arith.constant 0 : i32
    %c0_i32_1 = arith.constant 0 : i32
    return %c0_i32, %c0_i32_0 : i32, i32
  }
  func.func @transform_8(%arg0: i32) -> (i32, i32) {
    %c0_i32 = arith.constant 0 : i32
    %c0_i32_0 = arith.constant 0 : i32
    %c0_i32_1 = arith.constant 0 : i32
    return %c0_i32, %c0_i32_0 : i32, i32
  }
  func.func @transform_9(%arg0: i32) -> (i32, i32) {
    %c0_i32 = arith.constant 0 : i32
    %c0_i32_0 = arith.constant 0 : i32
    %c0_i32_1 = arith.constant 0 : i32
    return %c0_i32, %c0_i32_0 : i32, i32
  }
  func.func @transform_10(%arg0: i32) -> (i32, i32) {
    %c0_i32 = arith.constant 0 : i32
    %c0_i32_0 = arith.constant 0 : i32
    %c0_i32_1 = arith.constant 0 : i32
    return %c0_i32, %c0_i32_0 : i32, i32
  }
  func.func @transform_11(%arg0: i32) -> (i32, i32) {
    %c0_i32 = arith.constant 0 : i32
    %c0_i32_0 = arith.constant 0 : i32
    %c0_i32_1 = arith.constant 0 : i32
    return %c0_i32, %c0_i32_0 : i32, i32
  }
  func.func @transform_12(%arg0: i32) -> (i32, i32) {
    %c0_i32 = arith.constant 0 : i32
    %c0_i32_0 = arith.constant 0 : i32
    %c0_i32_1 = arith.constant 0 : i32
    return %c0_i32, %c0_i32_0 : i32, i32
  }
  func.func @transform_13(%arg0: i32) -> (i32, i32) {
    %c0_i32 = arith.constant 0 : i32
    %c0_i32_0 = arith.constant 0 : i32
    %c0_i32_1 = arith.constant 0 : i32
    return %c0_i32, %c0_i32_0 : i32, i32
  }
  func.func @transform_14(%arg0: i32) -> (i32, i32) {
    %c0_i32 = arith.constant 0 : i32
    %c0_i32_0 = arith.constant 0 : i32
    %c0_i32_1 = arith.constant 0 : i32
    return %c0_i32, %c0_i32_0 : i32, i32
  }
  func.func @transform_15(%arg0: i32) -> (i32, i32) {
    %c0_i32 = arith.constant 0 : i32
    %c0_i32_0 = arith.constant 0 : i32
    %c0_i32_1 = arith.constant 0 : i32
    return %c0_i32, %c0_i32_0 : i32, i32
  }
  func.func @transform_16(%arg0: i32) -> (i32, i32) {
    %c0_i32 = arith.constant 0 : i32
    %c0_i32_0 = arith.constant 0 : i32
    %c0_i32_1 = arith.constant 0 : i32
    return %c0_i32, %c0_i32_0 : i32, i32
  }
  func.func @transform_17(%arg0: i32) -> (i32, i32) {
    %c0_i32 = arith.constant 0 : i32
    %c0_i32_0 = arith.constant 0 : i32
    %c0_i32_1 = arith.constant 0 : i32
    return %c0_i32, %c0_i32_0 : i32, i32
  }
  func.func @transform_18(%arg0: i32) -> (i32, i32) {
    %c0_i32 = arith.constant 0 : i32
    %c0_i32_0 = arith.constant 0 : i32
    %c0_i32_1 = arith.constant 0 : i32
    return %c0_i32, %c0_i32_0 : i32, i32
  }
  func.func @transform_19(%arg0: i32) -> (i32, i32) {
    %c0_i32 = arith.constant 0 : i32
    %c0_i32_0 = arith.constant 0 : i32
    %c0_i32_1 = arith.constant 0 : i32
    return %c0_i32, %c0_i32_0 : i32, i32
  }
  func.func @transform_20(%arg0: i32) -> (i32, i32) {
    %c0_i32 = arith.constant 0 : i32
    %c0_i32_0 = arith.constant 0 : i32
    return %arg0, %c0_i32 : i32, i32
  }
  func.func @transform_21(%arg0: i32) -> (i32, i32) {
    %c0_i32 = arith.constant 0 : i32
    %c0_i32_0 = arith.constant 0 : i32
    return %arg0, %c0_i32 : i32, i32
  }
}

</mosaic_0001>

<bundles_post_ra>
// kernel: vae_forward.1
= control target key start
LH: loop header
LB: loop body
LE: loop exit
PB: predicated region body
PF: predicated region fallthrough
CT: control target
= control target key end

     0   :  { %s2778_s23 = smov 64   ;;  %s3690_s2 = inlined_call_operand.vmem [shape: bf16[1024,128], index: 2, kind: input, shape index: {}]   ;;  %s3691_s3 = inlined_call_operand.vmem [shape: f32[1,128], index: 3, kind: input, shape index: {}]   ;;  %s3692_s0 = inlined_call_operand.vmem [shape: bf16[8,1024], index: 0, kind: input, shape index: {}]   ;;  %s3693_s5 = inlined_call_operand.vmem [shape: f32[1,128], index: 5, kind: input, shape index: {}]   ;;  %s3694_s4 = inlined_call_operand.vmem [shape: bf16[128,128], index: 4, kind: input, shape index: {}]   ;;  %s3695_s6 = inlined_call_operand.vmem [shape: bf16[128,128], index: 6, kind: input, shape index: {}]   ;;  %s3696_s7 = inlined_call_operand.vmem [shape: f32[1,128], index: 7, kind: input, shape index: {}]   ;;  %s3697_s8 = inlined_call_operand.vmem [shape: bf16[128,128], index: 8, kind: input, shape index: {}]   ;;  %s3698_s9 = inlined_call_operand.vmem [shape: f32[1,128], index: 9, kind: input, shape index: {}]   ;;  %s3699_s10 = inlined_call_operand.vmem [shape: bf16[128,128], index: 10, kind: input, shape index: {}]   ;;  %s3700_s21 = inlined_call_operand.vmem [shape: f32[8,128], index: 21, kind: output, shape index: {1}]   ;;  %s3701_s11 = inlined_call_operand.vmem [shape: f32[1,128], index: 11, kind: input, shape index: {}]   ;;  %s3702_s12 = inlined_call_operand.vmem [shape: bf16[128,128], index: 12, kind: input, shape index: {}]   ;;  %s3703_s1 = inlined_call_operand.vmem [shape: bf16[8,128], index: 1, kind: input, shape index: {}]   ;;  %s3704_s13 = inlined_call_operand.vmem [shape: f32[1,128], index: 13, kind: input, shape index: {}]   ;;  %s3705_s14 = inlined_call_operand.vmem [shape: bf16[128,128], index: 14, kind: input, shape index: {}]   ;;  %s3706_s15 = inlined_call_operand.vmem [shape: f32[1,128], index: 15, kind: input, shape index: {}]   ;;  %s3707_s16 = inlined_call_operand.vmem [shape: bf16[128,128], index: 16, kind: input, shape index: {}]   ;;  %s3708_s17 = inlined_call_operand.vmem [shape: f32[1,128], index: 17, kind: input, shape index: {}]   ;;  %s3709_s18 = inlined_call_operand.vmem [shape: bf16[128,1024], index: 18, kind: input, shape index: {}]   ;;  %s3710_s19 = inlined_call_operand.vmem [shape: f32[1,1024], index: 19, kind: input, shape index: {}]   ;;  %s3711_s20 = inlined_call_operand.vmem [shape: bf16[8,1024], index: 20, kind: output, shape index: {0}]  }
   0x1   :  { %3716 = sst [smem:[#allocation2_spill]] %s3690_s2 }
   0x2   :  { %3717 = sst [smem:[#allocation3_spill]] %s3691_s3 }
   0x3   :  { %3718 = sst [smem:[#allocation4_spill]] %s3692_s0 }
   0x4   :  { %3719 = sst [smem:[#allocation5_spill]] %s3693_s5 }
   0x5   :  { %3720 = sst [smem:[#allocation6_spill]] %s3694_s4 }
   0x6   :  { %3721 = sst [smem:[#allocation7_spill]] %s3695_s6 }
   0x7   :  { %s3722_s26 = sld [smem:[#allocation2_spill]] }
   0x8   :  { %s3723_s27 = sld [smem:[#allocation4_spill]] }
   0x9   :  { %s3724_s28 = sld [smem:[#allocation6_spill]] }
   0xa   :  { %s3726_s6 = sld [smem:[#allocation7_spill]] }
   0xb   :  { %s3727_s30 = sld [smem:[#allocation5_spill]] }
   0xd   :  { %v2590_v0 = vld [vmem:[%s3722_s26 + $0x38] sm:$0xff]  ;;  %v2589_v4 = vld [vmem:[%s3722_s26 + $0x30] sm:$0xff]  ;;  %v2588_v8 = vld [vmem:[%s3722_s26 + $0x28] sm:$0xff] }
   0xe   :  { %v2598_v1 = vld [vmem:[%s3722_s26 + $0x78] sm:$0xff]  ;;  %615 = vmatpush.bf16.msra.mxu0 %v2590_v0  ;;  %v2597_v5 = vld [vmem:[%s3722_s26 + $0x70] sm:$0xff]  ;;  %v2596_v9 = vld [vmem:[%s3722_s26 + $0x68] sm:$0xff] }
   0xf   :  { %v2606_v2 = vld [vmem:[%s3722_s26 + $0xb8] sm:$0xff]  ;;  %628 = vmatpush.bf16.msra.mxu1 %v2598_v1  ;;  %v2605_v6 = vld [vmem:[%s3722_s26 + $0xb0] sm:$0xff]  ;;  %v2604_v10 = vld [vmem:[%s3722_s26 + $0xa8] sm:$0xff] }
  0x10   :  { %v2614_v3 = vld [vmem:[%s3722_s26 + $0xf8] sm:$0xff]  ;;  %641 = vmatpush.bf16.msra.mxu2 %v2606_v2  ;;  %v2613_v7 = vld [vmem:[%s3722_s26 + $0xf0] sm:$0xff]  ;;  %v2612_v11 = vld [vmem:[%s3722_s26 + $0xe8] sm:$0xff] }
  0x11   :  { %654 = vmatpush.bf16.msra.mxu3 %v2614_v3  ;;  %v2587_v12 = vld [vmem:[%s3722_s26 + $0x20] sm:$0xff]  ;;  %v2586_v16 = vld [vmem:[%s3722_s26 + $0x18] sm:$0xff]  ;;  %v2585_v20 = vld [vmem:[%s3722_s26 + $0x10] sm:$0xff] }
  0x12   :  { %616 = vmatpush.bf16.msra.mxu0 %v2589_v4  ;;  %v2595_v13 = vld [vmem:[%s3722_s26 + $0x60] sm:$0xff]  ;;  %v2594_v17 = vld [vmem:[%s3722_s26 + $0x58] sm:$0xff]  ;;  %v2593_v21 = vld [vmem:[%s3722_s26 + $0x50] sm:$0xff] }
  0x13   :  { %629 = vmatpush.bf16.msra.mxu1 %v2597_v5  ;;  %v2603_v14 = vld [vmem:[%s3722_s26 + $0xa0] sm:$0xff]  ;;  %v2602_v18 = vld [vmem:[%s3722_s26 + $0x98] sm:$0xff]  ;;  %v2601_v22 = vld [vmem:[%s3722_s26 + $0x90] sm:$0xff] }
  0x14   :  { %642 = vmatpush.bf16.msra.mxu2 %v2605_v6  ;;  %v2611_v15 = vld [vmem:[%s3722_s26 + $0xe0] sm:$0xff]  ;;  %v2610_v19 = vld [vmem:[%s3722_s26 + $0xd8] sm:$0xff]  ;;  %v2609_v23 = vld [vmem:[%s3722_s26 + $0xd0] sm:$0xff] }
  0x15   :  { %655 = vmatpush.bf16.msra.mxu3 %v2613_v7  ;;  %v2584_v24 = vld [vmem:[%s3722_s26 + $0x8] sm:$0xff]  ;;  %v67_v29 = vld [vmem:[%s3723_s27] sm:$0xff]  ;;  %v2622_v38 = vld [vmem:[%s3722_s26 + $0x138] sm:$0xff] }
  0x16   :  { %617 = vmatpush.bf16.msra.mxu0 %v2588_v8  ;;  %v2592_v25 = vld [vmem:[%s3722_s26 + $0x48] sm:$0xff]  ;;  %v2583_v30 = vld [vmem:[%s3722_s26] sm:$0xff]  ;;  %v207_v33 = vunpack.c.l.b16 %v67_v29  ;;  %v208_v37 = vunpack.c.h.b16 %v67_v29  ;;  %v2630_v39 = vld [vmem:[%s3722_s26 + $0x178] sm:$0xff] }
  0x17   :  { %630 = vmatpush.bf16.msra.mxu1 %v2596_v9  ;;  %v2600_v26 = vld [vmem:[%s3722_s26 + $0x88] sm:$0xff]  ;;  %v2591_v31 = vld [vmem:[%s3722_s26 + $0x40] sm:$0xff]  ;;  %v2638_v40 = vld [vmem:[%s3722_s26 + $0x1b8] sm:$0xff] }
  0x18   :  { %643 = vmatpush.bf16.msra.mxu2 %v2604_v10  ;;  %v2608_v27 = vld [vmem:[%s3722_s26 + $0xc8] sm:$0xff]  ;;  %v2599_v34 = vld [vmem:[%s3722_s26 + $0x80] sm:$0xff]  ;;  %v2646_v41 = vld [vmem:[%s3722_s26 + $0x1f8] sm:$0xff]  ;;  %v215_v43 = vpack.c.b16 %v207_v33, %v207_v33  ;;  %v216_v45 = vpack.c.b16 %v208_v37, %v208_v37 }
  0x19   :  { %656 = vmatpush.bf16.msra.mxu3 %v2612_v11  ;;  %v68_v28 = vld [vmem:[%s3723_s27 + $0x8] sm:$0xff]  ;;  %v2607_v35 = vld [vmem:[%s3722_s26 + $0xc0] sm:$0xff]  ;;  %v2621_v46 = vld [vmem:[%s3722_s26 + $0x130] sm:$0xff] }
  0x1a   :  { %618 = vmatpush.bf16.msra.mxu0 %v2587_v12  ;;  %v209_v32 = vunpack.c.l.b16 %v68_v28  ;;  %v210_v36 = vunpack.c.h.b16 %v68_v28  ;;  %v2629_v47 = vld [vmem:[%s3722_s26 + $0x170] sm:$0xff]  ;;  %v2620_v50 = vld [vmem:[%s3722_s26 + $0x128] sm:$0xff]  ;;  %v2619_v54 = vld [vmem:[%s3722_s26 + $0x120] sm:$0xff] }
  0x1b   :  { %631 = vmatpush.bf16.msra.mxu1 %v2595_v13  ;;  %v2637_v48 = vld [vmem:[%s3722_s26 + $0x1b0] sm:$0xff]  ;;  %v2628_v51 = vld [vmem:[%s3722_s26 + $0x168] sm:$0xff]  ;;  %v2627_v55 = vld [vmem:[%s3722_s26 + $0x160] sm:$0xff] }
  0x1c   :  { %644 = vmatpush.bf16.msra.mxu2 %v2603_v14  ;;  %v217_v42 = vpack.c.b16 %v209_v32, %v209_v32  ;;  %v218_v44 = vpack.c.b16 %v210_v36, %v210_v36  ;;  %v2645_v49 = vld [vmem:[%s3722_s26 + $0x1f0] sm:$0xff]  ;;  %v2636_v52 = vld [vmem:[%s3722_s26 + $0x1a8] sm:$0xff]  ;;  %v2635_v56 = vld [vmem:[%s3722_s26 + $0x1a0] sm:$0xff] }
  0x1d   :  { %657 = vmatpush.bf16.msra.mxu3 %v2611_v15  ;;  %v2644_v53 = vld [vmem:[%s3722_s26 + $0x1e8] sm:$0xff]  ;;  %v2643_v57 = vld [vmem:[%s3722_s26 + $0x1e0] sm:$0xff]  ;;  %v2618_v58 = vld [vmem:[%s3722_s26 + $0x118] sm:$0xff] }
  0x1e   :  { %619 = vmatpush.bf16.msra.mxu0 %v2586_v16  ;;  %v2626_v59 = vld [vmem:[%s3722_s26 + $0x158] sm:$0xff]  ;;  %v2617_v62 = vld [vmem:[%s3722_s26 + $0x110] sm:$0xff]  ;;  %v2616_v2 = vld [vmem:[%s3722_s26 + $0x108] sm:$0xff] }
  0x1f   :  { %632 = vmatpush.bf16.msra.mxu1 %v2594_v17  ;;  %v2634_v60 = vld [vmem:[%s3722_s26 + $0x198] sm:$0xff]  ;;  %v2625_v63 = vld [vmem:[%s3722_s26 + $0x150] sm:$0xff]  ;;  %v2624_v3 = vld [vmem:[%s3722_s26 + $0x148] sm:$0xff] }
  0x20   :  { %645 = vmatpush.bf16.msra.mxu2 %v2602_v18  ;;  %v2642_v61 = vld [vmem:[%s3722_s26 + $0x1d8] sm:$0xff]  ;;  %v2633_v0 = vld [vmem:[%s3722_s26 + $0x190] sm:$0xff]  ;;  %v2632_v5 = vld [vmem:[%s3722_s26 + $0x188] sm:$0xff] }
  0x21   :  { %658 = vmatpush.bf16.msra.mxu3 %v2610_v19  ;;  %v2641_v1 = vld [vmem:[%s3722_s26 + $0x1d0] sm:$0xff]  ;;  %v2640_v6 = vld [vmem:[%s3722_s26 + $0x1c8] sm:$0xff]  ;;  %v70_v7 = vld [vmem:[%s3723_s27 + $0x18] sm:$0xff] }
  0x22   :  { %620 = vmatpush.bf16.msra.mxu0 %v2585_v20  ;;  %v69_v4 = vld [vmem:[%s3723_s27 + $0x10] sm:$0xff]  ;;  %v2615_v10 = vld [vmem:[%s3722_s26 + $0x100] sm:$0xff]  ;;  %v213_v12 = vunpack.c.l.b16 %v70_v7  ;;  %v214_v13 = vunpack.c.h.b16 %v70_v7  ;;  %v2654_v20 = vld [vmem:[%s3724_s28 + $0x38] sm:$0xff] }
  0x23   :  { %633 = vmatpush.bf16.msra.mxu1 %v2593_v21  ;;  %v211_v8 = vunpack.c.l.b16 %v69_v4  ;;  %v212_v9 = vunpack.c.h.b16 %v69_v4  ;;  %v2623_v11 = vld [vmem:[%s3722_s26 + $0x140] sm:$0xff]  ;;  %v2653_v21 = vld [vmem:[%s3724_s28 + $0x30] sm:$0xff]  ;;  %v2648_v28 = vld [vmem:[%s3724_s28 + $0x8] sm:$0xff] }
  0x24   :  { %646 = vmatpush.bf16.msra.mxu2 %v2601_v22  ;;  %v2631_v14 = vld [vmem:[%s3722_s26 + $0x180] sm:$0xff]  ;;  %v221_v18 = vpack.c.b16 %v213_v12, %v213_v12  ;;  %v222_v19 = vpack.c.b16 %v214_v13, %v214_v13  ;;  %v2652_v22 = vld [vmem:[%s3724_s28 + $0x28] sm:$0xff]  ;;  %v2662_v36 = vld [vmem:[%s3726_s6 + $0x38] sm:$0xff] }
  0x25   :  { %659 = vmatpush.bf16.msra.mxu3 %v2609_v23  ;;  %v2639_v15 = vld [vmem:[%s3722_s26 + $0x1c0] sm:$0xff]  ;;  %v219_v16 = vpack.c.b16 %v211_v8, %v211_v8  ;;  %v220_v17 = vpack.c.b16 %v212_v9, %v212_v9  ;;  %s3725_s26 = sld [smem:[#allocation3_spill]]  ;;  %v2666_v4 = vld [vmem:[%s3697_s8 + $0x18] sm:$0xff]  ;;  %v2664_v13 = vld [vmem:[%s3697_s8 + $0x8] sm:$0xff] }
  0x26   :  { %621 = vmatpush.bf16.msra.mxu0 %v2584_v24  ;;  %v2651_v23 = vld [vmem:[%s3724_s28 + $0x20] sm:$0xff]  ;;  %v2650_v24 = vld [vmem:[%s3724_s28 + $0x18] sm:$0xff] }
  0x27   :  { %634 = vmatpush.bf16.msra.mxu1 %v2592_v25  ;;  %v2647_v33 = vld [vmem:[%s3724_s28] sm:$0xff] }
  0x28   :  { %647 = vmatpush.bf16.msra.mxu2 %v2600_v26  ;;  %v2649_v26 = vld [vmem:[%s3724_s28 + $0x10] sm:$0xff] }
  0x29   :  { %660 = vmatpush.bf16.msra.mxu3 %v2608_v27 }
  0x2a   :  { %622 = vmatpush.bf16.msra.mxu0 %v2583_v30 }
  0x2b   :  { %635 = vmatpush.bf16.msra.mxu1 %v2591_v31 }
  0x2c   :  { %648 = vmatpush.bf16.msra.mxu2 %v2599_v34  ;;  %v2768_v34 = vld [vmem:[%s3725_s26] ss:$0 sm:$0xff] }
  0x2d   :  { %661 = vmatpush.bf16.msra.mxu3 %v2607_v35  ;;  %623 = vmatmul.bf16.vlgmr.msra.gmra.mxu0 %v215_v43 }
  0x2e   :  { %667 = vmatpush.bf16.msrb.mxu0 %v2622_v38  ;;  %636 = vmatmul.bf16.vlgmr.msra.gmra.mxu1 %v216_v45  ;;  %v2661_v38 = vld [vmem:[%s3726_s6 + $0x30] sm:$0xff] }
  0x2f   :  { %680 = vmatpush.bf16.msrb.mxu1 %v2630_v39  ;;  %649 = vmatmul.bf16.vlgmr.msra.gmra.mxu2 %v217_v42  ;;  %v2659_v42 = vld [vmem:[%s3726_s6 + $0x20] sm:$0xff] }
  0x30   :  { %693 = vmatpush.bf16.msrb.mxu2 %v2638_v40  ;;  %662 = vmatmul.bf16.vlgmr.msra.gmra.mxu3 %v218_v44  ;;  %v2660_v40 = vld [vmem:[%s3726_s6 + $0x28] sm:$0xff]  ;;  %v2658_v44 = vld [vmem:[%s3726_s6 + $0x18] sm:$0xff] }
  0x31   :  { %706 = vmatpush.bf16.msrb.mxu3 %v2646_v41 }
  0x32   :  { %668 = vmatpush.bf16.msrb.mxu0 %v2621_v46 }
  0x33   :  { %681 = vmatpush.bf16.msrb.mxu1 %v2629_v47 }
  0x34   :  { %694 = vmatpush.bf16.msrb.mxu2 %v2637_v48 }
  0x35   :  { %707 = vmatpush.bf16.msrb.mxu3 %v2645_v49  ;;  %v2657_v49 = vld [vmem:[%s3726_s6 + $0x10] sm:$0xff] }
  0x36   :  { %669 = vmatpush.bf16.msrb.mxu0 %v2620_v50 }
  0x37   :  { %682 = vmatpush.bf16.msrb.mxu1 %v2628_v51 }
  0x38   :  { %695 = vmatpush.bf16.msrb.mxu2 %v2636_v52 }
  0x39   :  { %708 = vmatpush.bf16.msrb.mxu3 %v2644_v53 }
  0x3a   :  { %670 = vmatpush.bf16.msrb.mxu0 %v2619_v54 }
  0x3b   :  { %683 = vmatpush.bf16.msrb.mxu1 %v2627_v55 }
  0x3c   :  { %696 = vmatpush.bf16.msrb.mxu2 %v2635_v56 }
  0x3d   :  { %709 = vmatpush.bf16.msrb.mxu3 %v2643_v57 }
  0x3e   :  { %671 = vmatpush.bf16.msrb.mxu0 %v2618_v58 }
  0x3f   :  { %684 = vmatpush.bf16.msrb.mxu1 %v2626_v59 }
  0x40   :  { %697 = vmatpush.bf16.msrb.mxu2 %v2634_v60 }
  0x41   :  { %710 = vmatpush.bf16.msrb.mxu3 %v2642_v61 }
  0x42   :  { %672 = vmatpush.bf16.msrb.mxu0 %v2617_v62  ;;  %v2656_v62 = vld [vmem:[%s3726_s6 + $0x8] sm:$0xff] }
  0x43   :  { %685 = vmatpush.bf16.msrb.mxu1 %v2625_v63  ;;  %v2655_v63 = vld [vmem:[%s3726_s6] sm:$0xff] }
  0x44   :  { %698 = vmatpush.bf16.msrb.mxu2 %v2633_v0  ;;  %v2670_v0 = vld [vmem:[%s3697_s8 + $0x38] sm:$0xff] }
  0x45   :  { %711 = vmatpush.bf16.msrb.mxu3 %v2641_v1  ;;  %v2669_v1 = vld [vmem:[%s3697_s8 + $0x30] sm:$0xff] }
  0x46   :  { %673 = vmatpush.bf16.msrb.mxu0 %v2616_v2  ;;  %v2668_v2 = vld [vmem:[%s3697_s8 + $0x28] sm:$0xff] }
  0x47   :  { %686 = vmatpush.bf16.msrb.mxu1 %v2624_v3  ;;  %v2667_v3 = vld [vmem:[%s3697_s8 + $0x20] sm:$0xff] }
  0x48   :  { %699 = vmatpush.bf16.msrb.mxu2 %v2632_v5  ;;  %v2665_v5 = vld [vmem:[%s3697_s8 + $0x10] sm:$0xff] }
  0x49   :  { %712 = vmatpush.bf16.msrb.mxu3 %v2640_v6  ;;  %v2769_v6 = vld [vmem:[%s3727_s30] ss:$0 sm:$0xff] }
  0x4a   :  { %674 = vmatpush.bf16.msrb.mxu0 %v2615_v10 }
  0x4b   :  { %687 = vmatpush.bf16.msrb.mxu1 %v2623_v11 }
  0x4c   :  { %700 = vmatpush.bf16.msrb.mxu2 %v2631_v14  ;;  %v2663_v14 = vld [vmem:[%s3697_s8] sm:$0xff] }
  0x4d   :  { %713 = vmatpush.bf16.msrb.mxu3 %v2639_v15  ;;  %675 = vmatmul.bf16.vlgmr.msrb.gmra.mxu0 %v219_v16  ;;  %v2770_v15 = vld [vmem:[%s3696_s7] ss:$0 sm:$0xff] }
  0x4e   :  { %688 = vmatmul.bf16.vlgmr.msrb.gmra.mxu1 %v220_v17  ;;  %791 = vmatpush.bf16.msra.mxu0 %v2654_v20 }
  0x4f   :  { %701 = vmatmul.bf16.vlgmr.msrb.gmra.mxu2 %v221_v18  ;;  %876 = vmatpush.bf16.msra.mxu1 %v2662_v36  ;;  %v2684_v36 = vld [vmem:[%s3702_s12 + $0x28] sm:$0xff] }
  0x50   :  { %714 = vmatmul.bf16.vlgmr.msrb.gmra.mxu3 %v222_v19  ;;  %961 = vmatpush.bf16.msra.mxu2 %v2670_v0  ;;  %v2688_v0 = vld [vmem:[%s3705_s14 + $0x8] sm:$0xff] }
  0x52   :  { %792 = vmatpush.bf16.msra.mxu0 %v2653_v21 }
  0x53   :  { %877 = vmatpush.bf16.msra.mxu1 %v2661_v38 }
  0x54   :  { %962 = vmatpush.bf16.msra.mxu2 %v2669_v1  ;;  %v2687_v1 = vld [vmem:[%s3705_s14] sm:$0xff] }
  0x56   :  { %793 = vmatpush.bf16.msra.mxu0 %v2652_v22  ;;  %v2678_v22 = vld [vmem:[%s3699_s10 + $0x38] sm:$0xff] }
  0x57   :  { %878 = vmatpush.bf16.msra.mxu1 %v2660_v40  ;;  %1052 = vmatpush.bf16.msra.mxu3 %v2678_v22  ;;  %v2561_v22 = vld [vmem:[%s3709_s18 + $0x1c8] sm:$0xf] }
  0x58   :  { %963 = vmatpush.bf16.msra.mxu2 %v2668_v2  ;;  %v2702_v2 = vld [vmem:[%s3707_s16 + $0x38] sm:$0xff] }
  0x5a   :  { %794 = vmatpush.bf16.msra.mxu0 %v2651_v23  ;;  %v2677_v23 = vld [vmem:[%s3699_s10 + $0x30] sm:$0xff] }
  0x5b   :  { %879 = vmatpush.bf16.msra.mxu1 %v2659_v42  ;;  %1053 = vmatpush.bf16.msra.mxu3 %v2677_v23  ;;  %v2681_v42 = vld [vmem:[%s3702_s12 + $0x10] sm:$0xff]  ;;  %v2764_v23 = vld [vmem:[%s3709_s18 + $0x1e4] sm:$0xf0] }
  0x5c   :  { %964 = vmatpush.bf16.msra.mxu2 %v2667_v3  ;;  %v2701_v3 = vld [vmem:[%s3707_s16 + $0x30] sm:$0xff] }
  0x5e   :  { %795 = vmatpush.bf16.msra.mxu0 %v2650_v24  ;;  %v2676_v24 = vld [vmem:[%s3699_s10 + $0x28] sm:$0xff] }
  0x5f   :  { %880 = vmatpush.bf16.msra.mxu1 %v2658_v44  ;;  %1054 = vmatpush.bf16.msra.mxu3 %v2676_v24 }
  0x60   :  { %965 = vmatpush.bf16.msra.mxu2 %v2666_v4  ;;  %v2700_v4 = vld [vmem:[%s3707_s16 + $0x28] sm:$0xff] }
  0x62   :  { %796 = vmatpush.bf16.msra.mxu0 %v2649_v26  ;;  %v2771_v26 = vld [vmem:[%s3698_s9] ss:$0 sm:$0xff] }
  0x63   :  { %881 = vmatpush.bf16.msra.mxu1 %v2657_v49  ;;  %v2680_v49 = vld [vmem:[%s3702_s12 + $0x8] sm:$0xff] }
  0x64   :  { %966 = vmatpush.bf16.msra.mxu2 %v2665_v5  ;;  %v2699_v5 = vld [vmem:[%s3707_s16 + $0x20] sm:$0xff] }
  0x66   :  { %797 = vmatpush.bf16.msra.mxu0 %v2648_v28 }
  0x67   :  { %882 = vmatpush.bf16.msra.mxu1 %v2656_v62 }
  0x68   :  { %967 = vmatpush.bf16.msra.mxu2 %v2664_v13 }
  0x6a   :  { %798 = vmatpush.bf16.msra.mxu0 %v2647_v33  ;;  %v2671_v33 = vld [vmem:[%s3699_s10] sm:$0xff] }
  0x6b   :  { %883 = vmatpush.bf16.msra.mxu1 %v2655_v63 }
  0x6c   :  { %968 = vmatpush.bf16.msra.mxu2 %v2663_v14 }
  0x70   :  { %1307 = vmatpush.bf16.msrb.mxu2 %v2702_v2  ;;  %v2727_v2 = vld [vmem:[%s3709_s18 + $0xc4] sm:$0xf] }
  0x74   :  { %1308 = vmatpush.bf16.msrb.mxu2 %v2701_v3 }
  0x78   :  { %1309 = vmatpush.bf16.msrb.mxu2 %v2700_v4  ;;  %v2427_v4 = vld [vmem:[%s3709_s18 + $0xe0] sm:$0xf0] }
  0x7c   :  { %1310 = vmatpush.bf16.msrb.mxu2 %v2699_v5  ;;  %v2433_v5 = vld [vmem:[%s3709_s18 + $0xc8] sm:$0xf] }
  0xaa   :  { %v624_v25 = vpop.f32.mrf.mxu0 }
  0xab   :  { %v637_v27 = vpop.f32.mrf.mxu1  ;;  %v625_v39 = vadd.f32 %v2768_v34, %v624_v25  ;;  %v2675_v25 = vld [vmem:[%s3699_s10 + $0x20] sm:$0xff]  ;;  %v2686_v34 = vld [vmem:[%s3702_s12 + $0x38] sm:$0xff] }
  0xac   :  { %1055 = vmatpush.bf16.msra.mxu3 %v2675_v25  ;;  %1137 = vmatpush.bf16.msrb.mxu0 %v2686_v34  ;;  %v2562_v25 = vor.u32 %v2764_v23, %v2561_v22 }
  0xad   :  { %v638_v41 = vadd.f32 %v637_v27, %v625_v39  ;;  %v2682_v39 = vld [vmem:[%s3702_s12 + $0x18] sm:$0xff] }
  0xb2   :  { %v650_v29 = vpop.f32.mrf.mxu2  ;;  %v626_v31 = vpop.f32.mrf.mxu0 }
  0xb3   :  { %v663_v30 = vpop.f32.mrf.mxu3  ;;  %v639_v32 = vpop.f32.mrf.mxu1  ;;  %v651_v43 = vadd.f32 %v650_v29, %v638_v41  ;;  %v2673_v31 = vld [vmem:[%s3699_s10 + $0x10] sm:$0xff] }
  0xb4   :  { %v2672_v32 = vld [vmem:[%s3699_s10 + $0x8] sm:$0xff] }
  0xb5   :  { %v664_v45 = vadd.f32 %v663_v30, %v651_v43  ;;  %v2674_v30 = vld [vmem:[%s3699_s10 + $0x18] sm:$0xff]  ;;  %v976_v43 = vld [vmem:[%s3703_s1] sm:$0xf] }
  0xb6   :  { %1056 = vmatpush.bf16.msra.mxu3 %v2674_v30  ;;  %v977_v44 = vunpack.c.l.bf16 %v976_v43  ;;  %v2755_v30 = vld [vmem:[%s3709_s18 + $0x19c] sm:$0xf0]  ;;  %v2743_v43 = vld [vmem:[%s3709_s18 + $0x144] sm:$0xf] }
  0xba   :  { %v652_v35 = vpop.f32.mrf.mxu2  ;;  %1057 = vmatpush.bf16.msra.mxu3 %v2673_v31  ;;  %v2751_v31 = vld [vmem:[%s3709_s18 + $0x184] sm:$0xf] }
  0xbb   :  { %v665_v37 = vpop.f32.mrf.mxu3  ;;  %v2685_v35 = vld [vmem:[%s3702_s12 + $0x30] sm:$0xff] }
  0xbc   :  { %1138 = vmatpush.bf16.msrb.mxu0 %v2685_v35  ;;  %v2683_v37 = vld [vmem:[%s3702_s12 + $0x20] sm:$0xff]  ;;  %v2529_v35 = vld [vmem:[%s3709_s18 + $0x188] sm:$0xf] }
  0xbe   :  { %1058 = vmatpush.bf16.msra.mxu3 %v2672_v32  ;;  %v2523_v32 = vld [vmem:[%s3709_s18 + $0x1a0] sm:$0xf0] }
  0xbf   :  { %v2526_v34 = vor.u32 %v2751_v31, %v2523_v32  ;;  %v2716_v31 = vld [vmem:[%s3709_s18 + $0x64] sm:$0xf0]  ;;  %v2712_v32 = vld [vmem:[%s3709_s18 + $0x4c] sm:$0xf] }
  0xc0   :  { %1139 = vmatpush.bf16.msrb.mxu0 %v2684_v36  ;;  %v2756_v36 = vld [vmem:[%s3709_s18 + $0x1a4] sm:$0xf0] }
  0xc2   :  { %1059 = vmatpush.bf16.msra.mxu3 %v2671_v33 }
  0xc4   :  { %1140 = vmatpush.bf16.msrb.mxu0 %v2683_v37  ;;  %v2752_v37 = vld [vmem:[%s3709_s18 + $0x18c] sm:$0xf] }
  0xc8   :  { %1141 = vmatpush.bf16.msrb.mxu0 %v2682_v39  ;;  %v2531_v39 = vld [vmem:[%s3709_s18 + $0x1a8] sm:$0xf0] }
  0xca   :  { %v676_v46 = vpop.f32.mrf.mxu0 }
  0xcb   :  { %v689_v47 = vpop.f32.mrf.mxu1  ;;  %v677_v48 = vadd.f32 %v676_v46, %v664_v45 }
  0xcc   :  { %1142 = vmatpush.bf16.msrb.mxu0 %v2681_v42  ;;  %v2534_v42 = vor.u32 %v2752_v37, %v2531_v39  ;;  %v2703_v37 = vld [vmem:[%s3709_s18 + $0x4] sm:$0xf] }
  0xcd   :  { %v690_v50 = vadd.f32 %v689_v47, %v677_v48 }
  0xd0   :  { %1143 = vmatpush.bf16.msrb.mxu0 %v2680_v49  ;;  %v2499_v49 = vld [vmem:[%s3709_s18 + $0x168] sm:$0xf0] }
  0xd2   :  { %v702_v51 = vpop.f32.mrf.mxu2  ;;  %v678_v54 = vpop.f32.mrf.mxu0 }
  0xd3   :  { %v715_v52 = vpop.f32.mrf.mxu3  ;;  %v703_v53 = vadd.f32 %v702_v51, %v690_v50  ;;  %v691_v55 = vpop.f32.mrf.mxu1  ;;  %v2679_v50 = vld [vmem:[%s3702_s12] sm:$0xff]  ;;  %v2694_v51 = vld [vmem:[%s3705_s14 + $0x38] sm:$0xff] }
  0xd4   :  { %1144 = vmatpush.bf16.msrb.mxu0 %v2679_v50  ;;  %1222 = vmatpush.bf16.msrb.mxu1 %v2694_v51  ;;  %v2691_v54 = vld [vmem:[%s3705_s14 + $0x20] sm:$0xff]  ;;  %v2690_v55 = vld [vmem:[%s3705_s14 + $0x18] sm:$0xff] }
  0xd5   :  { %v716_v56 = vadd.f32 %v715_v52, %v703_v53  ;;  %v2693_v52 = vld [vmem:[%s3705_s14 + $0x30] sm:$0xff]  ;;  %v2692_v53 = vld [vmem:[%s3705_s14 + $0x28] sm:$0xff] }
  0xd7   :  { %vm719_vm0 = vcmp.gt.f32.partialorder %v716_v56, 0.0  ;;  %v720_v57 = vmul.f32 0.01, %v716_v56 }
  0xd8   :  { %1223 = vmatpush.bf16.msrb.mxu1 %v2693_v52  ;;  %v2457_v52 = vld [vmem:[%s3709_s18 + $0x100] sm:$0xf] }
  0xd9   :  { %v721_v58 = vsel %vm719_vm0, %v716_v56, %v720_v57  ;;  %v2689_v56 = vld [vmem:[%s3705_s14 + $0x10] sm:$0xff]  ;;  %v2772_v57 = vld [vmem:[%s3701_s11] ss:$0 sm:$0xff] }
  0xda   :  { %v722_v59 = vpack.c.bf16 %v721_v58, %v721_v58  ;;  %v704_v60 = vpop.f32.mrf.mxu2 }
  0xdb   :  { %v717_v61 = vpop.f32.mrf.mxu3 }
  0xdc   :  { %799 = vmatmul.bf16.vlgmr.msra.gmra.mxu0 %v722_v59  ;;  %1224 = vmatpush.bf16.msrb.mxu1 %v2692_v53  ;;  %v2739_v53 = vld [vmem:[%s3709_s18 + $0x11c] sm:$0xf0] }
  0xe0   :  { %1225 = vmatpush.bf16.msrb.mxu1 %v2691_v54  ;;  %v2735_v54 = vld [vmem:[%s3709_s18 + $0x104] sm:$0xf] }
  0xe4   :  { %1226 = vmatpush.bf16.msrb.mxu1 %v2690_v55 }
  0xe8   :  { %1227 = vmatpush.bf16.msrb.mxu1 %v2689_v56  ;;  %v2459_v56 = vld [vmem:[%s3709_s18 + $0x120] sm:$0xf0] }
  0xec   :  { %1228 = vmatpush.bf16.msrb.mxu1 %v2688_v0  ;;  %v2425_v0 = vld [vmem:[%s3709_s18 + $0xc0] sm:$0xf] }
  0xf0   :  { %1229 = vmatpush.bf16.msrb.mxu1 %v2687_v1  ;;  %v2731_v1 = vld [vmem:[%s3709_s18 + $0xdc] sm:$0xf0] }
 0x159   :  { %v800_v7 = vpop.f32.mrf.mxu0 }
 0x15a   :  { %v801_v8 = vadd.f32 %v2769_v6, %v800_v7  ;;  %v2698_v6 = vld [vmem:[%s3707_s16 + $0x18] sm:$0xff]  ;;  %v2697_v7 = vld [vmem:[%s3707_s16 + $0x10] sm:$0xff] }
 0x15b   :  { %1311 = vmatpush.bf16.msrb.mxu2 %v2698_v6  ;;  %v2732_v6 = vld [vmem:[%s3709_s18 + $0xe4] sm:$0xf0] }
 0x15c   :  { %vm804_vm1 = vcmp.gt.f32.partialorder %v801_v8, 0.0  ;;  %v805_v9 = vmul.f32 0.01, %v801_v8 }
 0x15e   :  { %v806_v10 = vsel %vm804_vm1, %v801_v8, %v805_v9  ;;  %v2773_v8 = vld [vmem:[%s3704_s13] ss:$0 sm:$0xff] }
 0x15f   :  { %v807_v11 = vpack.c.bf16 %v806_v10, %v806_v10  ;;  %1312 = vmatpush.bf16.msrb.mxu2 %v2697_v7  ;;  %v2728_v7 = vld [vmem:[%s3709_s18 + $0xcc] sm:$0xf] }
 0x161   :  { %v802_v12 = vpop.f32.mrf.mxu0  ;;  %884 = vmatmul.bf16.vlgmr.msra.gmra.mxu1 %v807_v11 }
 0x162   :  { %1752 = vmatpush.bf16.msra.mxu1 %v2562_v25  ;;  %v2361_v25 = vld [vmem:[%s3709_s18 + $0x40] sm:$0xf] }
 0x1de   :  { %v885_v16 = vpop.f32.mrf.mxu1 }
 0x1df   :  { %v886_v17 = vadd.f32 %v2770_v15, %v885_v16  ;;  %v2696_v15 = vld [vmem:[%s3707_s16 + $0x8] sm:$0xff]  ;;  %v2695_v16 = vld [vmem:[%s3707_s16] sm:$0xff] }
 0x1e0   :  { %1313 = vmatpush.bf16.msrb.mxu2 %v2696_v15 }
 0x1e1   :  { %vm889_vm2 = vcmp.gt.f32.partialorder %v886_v17, 0.0  ;;  %v890_v18 = vmul.f32 0.01, %v886_v17 }
 0x1e3   :  { %v891_v19 = vsel %vm889_vm2, %v886_v17, %v890_v18  ;;  %v2553_v17 = vld [vmem:[%s3709_s18 + $0x1c0] sm:$0xf] }
 0x1e4   :  { %v892_v20 = vpack.c.bf16 %v891_v19, %v891_v19  ;;  %1314 = vmatpush.bf16.msrb.mxu2 %v2695_v16  ;;  %v2763_v18 = vld [vmem:[%s3709_s18 + $0x1dc] sm:$0xf0]  ;;  %v2759_v19 = vld [vmem:[%s3709_s18 + $0x1c4] sm:$0xf] }
 0x1e5   :  { %v2395_v16 = vld [vmem:[%s3709_s18 + $0xa0] sm:$0xf0] }
 0x1e6   :  { %v887_v21 = vpop.f32.mrf.mxu1  ;;  %969 = vmatmul.bf16.vlgmr.msra.gmra.mxu2 %v892_v20  ;;  %v2554_v20 = vor.u32 %v2763_v18, %v2553_v17  ;;  %v2401_v17 = vld [vmem:[%s3709_s18 + $0x88] sm:$0xf] }
 0x1e7   :  { %v2555_v21 = vld [vmem:[%s3709_s18 + $0x1e0] sm:$0xf0]  ;;  %v2724_v18 = vld [vmem:[%s3709_s18 + $0xa4] sm:$0xf0] }
 0x1e8   :  { %v2558_v24 = vor.u32 %v2759_v19, %v2555_v21  ;;  %1726 = vmatpush.bf16.msrb.mxu3 %v2554_v20  ;;  %v2720_v19 = vld [vmem:[%s3709_s18 + $0x8c] sm:$0xf]  ;;  %v2774_v21 = vld [vmem:[%s3706_s15] ss:$0 sm:$0xff] }
 0x1e9   :  { %v2403_v20 = vld [vmem:[%s3709_s18 + $0xa8] sm:$0xf0] }
 0x1ea   :  { %1739 = vmatpush.bf16.msra.mxu0 %v2558_v24  ;;  %v2402_v24 = vor.u32 %v2724_v18, %v2401_v17  ;;  %v2749_v17 = vld [vmem:[%s3709_s18 + $0x16c] sm:$0xf0]  ;;  %v2745_v18 = vld [vmem:[%s3709_s18 + $0x154] sm:$0xf] }
 0x1ee   :  { %1740 = vmatpush.bf16.msra.mxu0 %v2526_v34 }
 0x269   :  { %v970_v27 = vpop.f32.mrf.mxu2 }
 0x26a   :  { %v971_v28 = vadd.f32 %v2771_v26, %v970_v27  ;;  %v2760_v26 = vld [vmem:[%s3709_s18 + $0x1cc] sm:$0xf] }
 0x26b   :  { %v2563_v27 = vld [vmem:[%s3709_s18 + $0x1e8] sm:$0xf0] }
 0x26c   :  { %1838 = vst [vmem:[%s3700_s21] sm:$0xff] %v971_v28  ;;  %974 = vrot.lane.b32.xlu0 %v971_v28, %s2778_s23 }
 0x271   :  { %v972_v29 = vpop.f32.mrf.mxu2 }
 0x272   :  { %v2566_v29 = vor.u32 %v2760_v26, %v2563_v27  ;;  %v2715_v26 = vld [vmem:[%s3709_s18 + $0x5c] sm:$0xf0]  ;;  %v2711_v27 = vld [vmem:[%s3709_s18 + $0x44] sm:$0xf] }
 0x273   :  { %v2362_v34 = vor.u32 %v2715_v26, %v2361_v25  ;;  %v2746_v25 = vld [vmem:[%s3709_s18 + $0x15c] sm:$0xf] }
 0x274   :  { %1765 = vmatpush.bf16.msra.mxu2 %v2566_v29  ;;  %v2363_v29 = vld [vmem:[%s3709_s18 + $0x60] sm:$0xf0]  ;;  %v2515_v26 = vld [vmem:[%s3709_s18 + $0x178] sm:$0xf0] }
 0x275   :  { %v2366_v39 = vor.u32 %v2711_v27, %v2363_v29  ;;  %v2518_v27 = vor.u32 %v2746_v25, %v2515_v26  ;;  %v2741_v29 = vld [vmem:[%s3709_s18 + $0x12c] sm:$0xf0] }
 0x278   :  { %1766 = vmatpush.bf16.msra.mxu2 %v2534_v42  ;;  %v2337_v42 = vld [vmem:[%s3709_s18 + $0x8] sm:$0xf] }
 0x2de   :  { %v975_v38 = vpop.permute.xlu0 %974 }
 0x2df   :  { %v978_v40 = vmul.f32 0.5, %v975_v38  ;;  %v2530_v38 = vor.u32 %v2756_v36, %v2529_v35  ;;  %v2329_v35 = vld [vmem:[%s3709_s18] sm:$0xf] }
 0x2e0   :  { %v2707_v36 = vld [vmem:[%s3709_s18 + $0x1c] sm:$0xf0] }
 0x2e1   :  { %v979_v41 = vmul.f32 1.442695, %v978_v40  ;;  %v2489_v40 = vld [vmem:[%s3709_s18 + $0x140] sm:$0xf]  ;;  %1753 = vmatpush.bf16.msra.mxu1 %v2530_v38 }
 0x2e3   :  { %2776 = vpow2.f32 %v979_v41  ;;  %v2747_v41 = vld [vmem:[%s3709_s18 + $0x15c] sm:$0xf0] }
 0x2e9   :  { %v2777_v45 = vpop.eup %2776 }
 0x2ea   :  { %v981_v46 = vmul.f32 %v2777_v45, %v977_v44  ;;  %v2491_v44 = vld [vmem:[%s3709_s18 + $0x160] sm:$0xf0]  ;;  %v2497_v45 = vld [vmem:[%s3709_s18 + $0x148] sm:$0xf] }
 0x2eb   :  { %v2494_v50 = vor.u32 %v2743_v43, %v2491_v44  ;;  %v2708_v43 = vld [vmem:[%s3709_s18 + $0x24] sm:$0xf0] }
 0x2ec   :  { %v982_v47 = vadd.f32 %v981_v46, %v971_v28  ;;  %v2521_v28 = vld [vmem:[%s3709_s18 + $0x180] sm:$0xf]  ;;  %v2490_v46 = vor.u32 %v2747_v41, %v2489_v40  ;;  %v2331_v41 = vld [vmem:[%s3709_s18 + $0x20] sm:$0xf0] }
 0x2ed   :  { %v2522_v33 = vor.u32 %v2755_v30, %v2521_v28  ;;  %1741 = vmatpush.bf16.msra.mxu0 %v2494_v50  ;;  %v2406_v28 = vor.u32 %v2720_v19, %v2403_v20  ;;  %v2369_v30 = vld [vmem:[%s3709_s18 + $0x48] sm:$0xf]  ;;  %v2761_v50 = vld [vmem:[%s3709_s18 + $0x1d4] sm:$0xf] }
 0x2ee   :  { %v983_v48 = vpack.c.bf16 %v982_v47, %v982_v47  ;;  %v2748_v47 = vld [vmem:[%s3709_s18 + $0x164] sm:$0xf0]  ;;  %v2370_v40 = vor.u32 %v2716_v31, %v2369_v30  ;;  %v2507_v20 = vld [vmem:[%s3709_s18 + $0x170] sm:$0xf0] }
 0x2ef   :  { %1727 = vmatpush.bf16.msrb.mxu3 %v2522_v33  ;;  %v2498_v51 = vor.u32 %v2748_v47, %v2497_v45  ;;  %v2371_v33 = vld [vmem:[%s3709_s18 + $0x68] sm:$0xf0]  ;;  %v2737_v30 = vld [vmem:[%s3709_s18 + $0x114] sm:$0xf] }
 0x2f0   :  { %1060 = vmatmul.bf16.vlgmr.msra.gmra.mxu3 %v983_v48  ;;  %v2744_v48 = vld [vmem:[%s3709_s18 + $0x14c] sm:$0xf]  ;;  %v2374_v45 = vor.u32 %v2712_v32, %v2371_v33  ;;  %v2475_v32 = vld [vmem:[%s3709_s18 + $0x130] sm:$0xf0]  ;;  %v2481_v33 = vld [vmem:[%s3709_s18 + $0x118] sm:$0xf] }
 0x2f1   :  { %v2502_v55 = vor.u32 %v2744_v48, %v2499_v49  ;;  %1754 = vmatpush.bf16.msra.mxu1 %v2498_v51  ;;  %v2339_v47 = vld [vmem:[%s3709_s18 + $0x28] sm:$0xf0]  ;;  %v2569_v48 = vld [vmem:[%s3709_s18 + $0x1d0] sm:$0xf]  ;;  %v2571_v51 = vld [vmem:[%s3709_s18 + $0x1f0] sm:$0xf0] }
 0x2f2   :  { %v2765_v49 = vld [vmem:[%s3709_s18 + $0x1ec] sm:$0xf0] }
 0x2f3   :  { %1728 = vmatpush.bf16.msrb.mxu3 %v2490_v46  ;;  %1767 = vmatpush.bf16.msra.mxu2 %v2502_v55  ;;  %v2704_v46 = vld [vmem:[%s3709_s18 + $0xc] sm:$0xf]  ;;  %v2334_v55 = vor.u32 %v2703_v37, %v2331_v41  ;;  %v2738_v37 = vld [vmem:[%s3709_s18 + $0x11c] sm:$0xf]  ;;  %v2733_v41 = vld [vmem:[%s3709_s18 + $0xec] sm:$0xf0] }
 0x373   :  { %v1061_v58 = vpop.f32.mrf.mxu3 }
 0x374   :  { %v1062_v59 = vadd.f32 %v2772_v57, %v1061_v58  ;;  %v2465_v57 = vld [vmem:[%s3709_s18 + $0x108] sm:$0xf] }
 0x375   :  { %v2740_v58 = vld [vmem:[%s3709_s18 + $0x124] sm:$0xf0] }
 0x376   :  { %vm1065_vm3 = vcmp.gt.f32.partialorder %v1062_v59, 0.0  ;;  %v1066_v60 = vmul.f32 0.01, %v1062_v59 }
 0x378   :  { %v1067_v61 = vsel %vm1065_vm3, %v1062_v59, %v1066_v60  ;;  %v2736_v59 = vld [vmem:[%s3709_s18 + $0x10c] sm:$0xf] }
 0x379   :  { %v1068_v62 = vpack.c.bf16 %v1067_v61, %v1067_v61  ;;  %v2467_v60 = vld [vmem:[%s3709_s18 + $0x128] sm:$0xf0]  ;;  %v2458_v61 = vor.u32 %v2739_v53, %v2457_v52  ;;  %v2330_v53 = vor.u32 %v2707_v36, %v2329_v35  ;;  %v2478_v35 = vor.u32 %v2737_v30, %v2475_v32 }
 0x37a   :  { %v2470_v3 = vor.u32 %v2736_v59, %v2467_v60  ;;  %v2338_v60 = vor.u32 %v2708_v43, %v2337_v42  ;;  %v2729_v42 = vld [vmem:[%s3709_s18 + $0xd4] sm:$0xf] }
 0x37b   :  { %v1063_v63 = vpop.f32.mrf.mxu3  ;;  %1145 = vmatmul.bf16.vlgmr.msrb.gmra.mxu0 %v1068_v62  ;;  %v2462_v62 = vor.u32 %v2735_v54, %v2459_v56  ;;  %1729 = vmatpush.bf16.msrb.mxu3 %v2458_v61  ;;  %v2577_v54 = vld [vmem:[%s3709_s18 + $0x1d8] sm:$0xf]  ;;  %v2342_v61 = vor.u32 %v2704_v46, %v2339_v47 }
 0x37c   :  { %v2466_v63 = vor.u32 %v2740_v58, %v2465_v57  ;;  %1768 = vmatpush.bf16.msra.mxu2 %v2470_v3  ;;  %v2766_v56 = vld [vmem:[%s3709_s18 + $0x1f4] sm:$0xf0]  ;;  %v2762_v57 = vld [vmem:[%s3709_s18 + $0x1dc] sm:$0xf] }
 0x37d   :  { %1742 = vmatpush.bf16.msra.mxu0 %v2462_v62  ;;  %v2579_v58 = vld [vmem:[%s3709_s18 + $0x1f8] sm:$0xf0]  ;;  %v2578_v3 = vor.u32 %v2766_v56, %v2577_v54  ;;  %v2734_v46 = vld [vmem:[%s3709_s18 + $0xf4] sm:$0xf0]  ;;  %v2721_v54 = vld [vmem:[%s3709_s18 + $0x94] sm:$0xf] }
 0x37e   :  { %1755 = vmatpush.bf16.msra.mxu1 %v2466_v63  ;;  %v2570_v63 = vor.u32 %v2765_v49, %v2569_v48  ;;  %v2730_v49 = vld [vmem:[%s3709_s18 + $0xdc] sm:$0xf] }
 0x3f8   :  { %v1146_v9 = vpop.f32.mrf.mxu0 }
 0x3f9   :  { %v1147_v10 = vadd.f32 %v2773_v8, %v1146_v9  ;;  %v2435_v8 = vld [vmem:[%s3709_s18 + $0xe8] sm:$0xf0]  ;;  %v2426_v9 = vor.u32 %v2731_v1, %v2425_v0  ;;  %v2574_v0 = vor.u32 %v2761_v50, %v2571_v51  ;;  %v2537_v1 = vld [vmem:[%s3709_s18 + $0x190] sm:$0xf]  ;;  %v2451_v50 = vld [vmem:[%s3709_s18 + $0xf8] sm:$0xf0] }
 0x3fa   :  { %v2438_v15 = vor.u32 %v2728_v7, %v2435_v8  ;;  %v2545_v7 = vld [vmem:[%s3709_s18 + $0x198] sm:$0xf]  ;;  %v2409_v51 = vld [vmem:[%s3709_s18 + $0x90] sm:$0xf] }
 0x3fb   :  { %vm1150_vm4 = vcmp.gt.f32.partialorder %v1147_v10, 0.0  ;;  %v1151_v11 = vmul.f32 0.01, %v1147_v10  ;;  %1730 = vmatpush.bf16.msrb.mxu3 %v2426_v9  ;;  %v2758_v9 = vld [vmem:[%s3709_s18 + $0x1b4] sm:$0xf0] }
 0x3fc   :  { %1769 = vmatpush.bf16.msra.mxu2 %v2438_v15 }
 0x3fd   :  { %v1152_v12 = vsel %vm1150_vm4, %v1147_v10, %v1151_v11  ;;  %v2430_v10 = vor.u32 %v2727_v2, %v2427_v4  ;;  %v2434_v11 = vor.u32 %v2732_v6, %v2433_v5  ;;  %v2757_v2 = vld [vmem:[%s3709_s18 + $0x1ac] sm:$0xf0]  ;;  %v2582_v4 = vor.u32 %v2762_v57, %v2579_v58  ;;  %v2753_v5 = vld [vmem:[%s3709_s18 + $0x194] sm:$0xf]  ;;  %v2417_v58 = vld [vmem:[%s3709_s18 + $0x98] sm:$0xf] }
 0x3fe   :  { %v1153_v13 = vpack.c.bf16 %v1152_v12, %v1152_v12  ;;  %v2393_v12 = vld [vmem:[%s3709_s18 + $0x80] sm:$0xf]  ;;  %v2539_v6 = vld [vmem:[%s3709_s18 + $0x1b0] sm:$0xf0] }
 0x3ff   :  { %1743 = vmatpush.bf16.msra.mxu0 %v2430_v10  ;;  %1756 = vmatpush.bf16.msra.mxu1 %v2434_v11  ;;  %v2754_v10 = vld [vmem:[%s3709_s18 + $0x19c] sm:$0xf] }
 0x400   :  { %v1148_v14 = vpop.f32.mrf.mxu0  ;;  %1230 = vmatmul.bf16.vlgmr.msrb.gmra.mxu1 %v1153_v13  ;;  %v2723_v13 = vld [vmem:[%s3709_s18 + $0x9c] sm:$0xf0]  ;;  %1770 = vmatpush.bf16.msra.mxu2 %v2406_v28  ;;  %v2547_v11 = vld [vmem:[%s3709_s18 + $0x1b8] sm:$0xf0]  ;;  %v2473_v28 = vld [vmem:[%s3709_s18 + $0x110] sm:$0xf] }
 0x401   :  { %v2719_v14 = vld [vmem:[%s3709_s18 + $0x84] sm:$0xf]  ;;  %v2394_v22 = vor.u32 %v2723_v13, %v2393_v12  ;;  %v2538_v12 = vor.u32 %v2757_v2, %v2537_v1  ;;  %v2542_v13 = vor.u32 %v2753_v5, %v2539_v6  ;;  %v2550_v15 = vor.u32 %v2754_v10, %v2547_v11  ;;  %v2713_v2 = vld [vmem:[%s3709_s18 + $0x54] sm:$0xf]  ;;  %v2718_v6 = vld [vmem:[%s3709_s18 + $0x74] sm:$0xf0] }
 0x402   :  { %v2398_v23 = vor.u32 %v2719_v14, %v2395_v16  ;;  %v2546_v14 = vor.u32 %v2758_v9, %v2545_v7  ;;  %v2505_v16 = vld [vmem:[%s3709_s18 + $0x150] sm:$0xf]  ;;  %v2474_v31 = vor.u32 %v2741_v29, %v2473_v28  ;;  %v2714_v7 = vld [vmem:[%s3709_s18 + $0x5c] sm:$0xf] }
 0x403   :  { %1731 = vmatpush.bf16.msrb.mxu3 %v2394_v22  ;;  %1757 = vmatpush.bf16.msra.mxu1 %v2402_v24  ;;  %v2506_v19 = vor.u32 %v2749_v17, %v2505_v16  ;;  %v2750_v22 = vld [vmem:[%s3709_s18 + $0x174] sm:$0xf0]  ;;  %v2345_v11 = vld [vmem:[%s3709_s18 + $0x10] sm:$0xf] }
 0x404   :  { %1744 = vmatpush.bf16.msra.mxu0 %v2398_v23  ;;  %1771 = vmatpush.bf16.msra.mxu2 %v2374_v45  ;;  %v2510_v23 = vor.u32 %v2745_v18, %v2507_v20  ;;  %v2449_v45 = vld [vmem:[%s3709_s18 + $0xd8] sm:$0xf]  ;;  %v2706_v18 = vld [vmem:[%s3709_s18 + $0x1c] sm:$0xf] }
 0x405   :  { %v2450_v48 = vor.u32 %v2734_v46, %v2449_v45  ;;  %v2353_v16 = vld [vmem:[%s3709_s18 + $0x18] sm:$0xf] }
 0x406   :  { %v2710_v17 = vld [vmem:[%s3709_s18 + $0x34] sm:$0xf0] }
 0x407   :  { %1732 = vmatpush.bf16.msrb.mxu3 %v2362_v34  ;;  %1758 = vmatpush.bf16.msra.mxu1 %v2370_v40  ;;  %v2742_v34 = vld [vmem:[%s3709_s18 + $0x134] sm:$0xf0]  ;;  %v2441_v40 = vld [vmem:[%s3709_s18 + $0xd0] sm:$0xf] }
 0x408   :  { %1745 = vmatpush.bf16.msra.mxu0 %v2366_v39  ;;  %1772 = vmatpush.bf16.msra.mxu2 %v2342_v61  ;;  %v2482_v36 = vor.u32 %v2742_v34, %v2481_v33  ;;  %v2442_v43 = vor.u32 %v2733_v41, %v2441_v40 }
 0x40b   :  { %1733 = vmatpush.bf16.msrb.mxu3 %v2330_v53  ;;  %1759 = vmatpush.bf16.msra.mxu1 %v2338_v60  ;;  %v2725_v53 = vld [vmem:[%s3709_s18 + $0xac] sm:$0xf0]  ;;  %v2722_v60 = vld [vmem:[%s3709_s18 + $0x9c] sm:$0xf] }
 0x40c   :  { %1746 = vmatpush.bf16.msra.mxu0 %v2334_v55  ;;  %v2411_v55 = vld [vmem:[%s3709_s18 + $0xb0] sm:$0xf0]  ;;  %v2410_v56 = vor.u32 %v2725_v53, %v2409_v51 }
 0x40d   :  { %v2414_v57 = vor.u32 %v2721_v54, %v2411_v55 }
 0x40f   :  { %1778 = vmatpush.bf16.msra.mxu3 %v2570_v63  ;;  %1804 = vmatpush.bf16.msrb.mxu1 %v2578_v3  ;;  %v2377_v63 = vld [vmem:[%s3709_s18 + $0x50] sm:$0xf]  ;;  %v2379_v3 = vld [vmem:[%s3709_s18 + $0x70] sm:$0xf0] }
 0x410   :  { %1791 = vmatpush.bf16.msrb.mxu0 %v2574_v0  ;;  %v2717_v0 = vld [vmem:[%s3709_s18 + $0x6c] sm:$0xf0]  ;;  %v2382_v9 = vor.u32 %v2713_v2, %v2379_v3 }
 0x411   :  { %v2378_v5 = vor.u32 %v2717_v0, %v2377_v63 }
 0x413   :  { %1779 = vmatpush.bf16.msra.mxu3 %v2538_v12  ;;  %1805 = vmatpush.bf16.msrb.mxu1 %v2546_v14  ;;  %v2709_v12 = vld [vmem:[%s3709_s18 + $0x2c] sm:$0xf0] }
 0x414   :  { %1792 = vmatpush.bf16.msrb.mxu0 %v2542_v13  ;;  %v2705_v13 = vld [vmem:[%s3709_s18 + $0x14] sm:$0xf]  ;;  %v2346_v20 = vor.u32 %v2709_v12, %v2345_v11 }
 0x417   :  { %1780 = vmatpush.bf16.msra.mxu3 %v2506_v19  ;;  %v2355_v19 = vld [vmem:[%s3709_s18 + $0x38] sm:$0xf0] }
 0x418   :  { %1793 = vmatpush.bf16.msrb.mxu0 %v2510_v23  ;;  %v2358_v23 = vor.u32 %v2706_v18, %v2355_v19 }
 0x41b   :  { %1781 = vmatpush.bf16.msra.mxu3 %v2474_v31  ;;  %v1388_v31 = vld [vmem:[%s3710_s19] sm:$0xff] }
 0x41c   :  { %1794 = vmatpush.bf16.msrb.mxu0 %v2478_v35  ;;  %v1391_v34 = vperm.slane %v1388_v31, 1  ;;  %v1390_v35 = vperm.slane %v1388_v31, 0  ;;  %v1394_v53 = vperm.slane %v1388_v31, 4  ;;  %v1396_v54 = vperm.slane %v1388_v31, 6 }
 0x41d   :  { %v1397_v55 = vperm.slane %v1388_v31, 7 }
 0x41f   :  { %1782 = vmatpush.bf16.msra.mxu3 %v2442_v43 }
 0x423   :  { %1783 = vmatpush.bf16.msra.mxu3 %v2410_v56 }
 0x427   :  { %1784 = vmatpush.bf16.msra.mxu3 %v2378_v5 }
 0x42b   :  { %1785 = vmatpush.bf16.msra.mxu3 %v2346_v20 }
 0x47d   :  { %v1231_v38 = vpop.f32.mrf.mxu1 }
 0x47e   :  { %v1232_v44 = vadd.f32 %v2774_v21, %v1231_v38  ;;  %v2513_v21 = vld [vmem:[%s3709_s18 + $0x158] sm:$0xf]  ;;  %v2483_v38 = vld [vmem:[%s3709_s18 + $0x138] sm:$0xf0] }
 0x47f   :  { %v2514_v24 = vor.u32 %v2750_v22, %v2513_v21  ;;  %v2486_v39 = vor.u32 %v2738_v37, %v2483_v38  ;;  %v2354_v22 = vor.u32 %v2710_v17, %v2353_v16  ;;  %v1393_v37 = vperm.slane %v1388_v31, 3 }
 0x480   :  { %vm1235_vm5 = vcmp.gt.f32.partialorder %v1232_v44, 0.0  ;;  %v1236_v52 = vmul.f32 0.01, %v1232_v44 }
 0x481   :  { %1806 = vmatpush.bf16.msrb.mxu1 %v2514_v24  ;;  %v2775_v24 = vld [vmem:[%s3708_s17] ss:$0 sm:$0xff] }
 0x482   :  { %v1237_v59 = vsel %vm1235_vm5, %v1232_v44, %v1236_v52  ;;  %v2443_v44 = vld [vmem:[%s3709_s18 + $0xf0] sm:$0xf0]  ;;  %v2454_v52 = vor.u32 %v2730_v49, %v2451_v50 }
 0x483   :  { %v1238_v62 = vpack.c.bf16 %v1237_v59, %v1237_v59  ;;  %v2446_v47 = vor.u32 %v2729_v42, %v2443_v44  ;;  %v2726_v59 = vld [vmem:[%s3709_s18 + $0xb4] sm:$0xf0] }
 0x484   :  { %v2418_v61 = vor.u32 %v2726_v59, %v2417_v58 }
 0x485   :  { %v1233_v8 = vpop.f32.mrf.mxu1  ;;  %1315 = vmatmul.bf16.vlgmr.msrb.gmra.mxu2 %v1238_v62  ;;  %1807 = vmatpush.bf16.msrb.mxu1 %v2482_v36  ;;  %v2419_v62 = vld [vmem:[%s3709_s18 + $0xb8] sm:$0xf0]  ;;  %v1392_v36 = vperm.slane %v1388_v31, 2 }
 0x486   :  { %1817 = vmatpush.bf16.msrb.mxu2 %v2582_v4  ;;  %1795 = vmatpush.bf16.msrb.mxu0 %v2446_v47  ;;  %v2422_v1 = vor.u32 %v2722_v60, %v2419_v62  ;;  %v2385_v4 = vld [vmem:[%s3709_s18 + $0x58] sm:$0xf]  ;;  %v2387_v8 = vld [vmem:[%s3709_s18 + $0x78] sm:$0xf0] }
 0x487   :  { %v2386_v10 = vor.u32 %v2718_v6, %v2385_v4  ;;  %v2390_v14 = vor.u32 %v2714_v7, %v2387_v8 }
 0x489   :  { %1808 = vmatpush.bf16.msrb.mxu1 %v2450_v48 }
 0x48a   :  { %1818 = vmatpush.bf16.msrb.mxu2 %v2550_v15  ;;  %1796 = vmatpush.bf16.msrb.mxu0 %v2414_v57  ;;  %v2347_v15 = vld [vmem:[%s3709_s18 + $0x30] sm:$0xf0] }
 0x48b   :  { %v2350_v21 = vor.u32 %v2705_v13, %v2347_v15 }
 0x48d   :  { %1809 = vmatpush.bf16.msrb.mxu1 %v2418_v61 }
 0x48e   :  { %1819 = vmatpush.bf16.msrb.mxu2 %v2518_v27  ;;  %1797 = vmatpush.bf16.msrb.mxu0 %v2382_v9 }
 0x491   :  { %1810 = vmatpush.bf16.msrb.mxu1 %v2386_v10 }
 0x492   :  { %1820 = vmatpush.bf16.msrb.mxu2 %v2486_v39  ;;  %1798 = vmatpush.bf16.msrb.mxu0 %v2350_v21 }
 0x495   :  { %1811 = vmatpush.bf16.msrb.mxu1 %v2354_v22 }
 0x496   :  { %1821 = vmatpush.bf16.msrb.mxu2 %v2454_v52  ;;  %v1395_v52 = vperm.slane %v1388_v31, 5 }
 0x49a   :  { %1822 = vmatpush.bf16.msrb.mxu2 %v2422_v1 }
 0x49e   :  { %1823 = vmatpush.bf16.msrb.mxu2 %v2390_v14 }
 0x4a2   :  { %1824 = vmatpush.bf16.msrb.mxu2 %v2358_v23 }
 0x508   :  { %v1316_v25 = vpop.f32.mrf.mxu2 }
 0x509   :  { %v1317_v26 = vadd.f32 %v2775_v24, %v1316_v25 }
 0x50b   :  { %vm1320_vm6 = vcmp.gt.f32.partialorder %v1317_v26, 0.0  ;;  %v1321_v27 = vmul.f32 0.01, %v1317_v26 }
 0x50d   :  { %v1322_v28 = vsel %vm1320_vm6, %v1317_v26, %v1321_v27 }
 0x50e   :  { %v1323_v29 = vpack.c.bf16 %v1322_v28, %v1322_v28 }
 0x510   :  { %v1318_v30 = vpop.f32.mrf.mxu2  ;;  %1734 = vmatmul.bf16.vlgmr.msrb.gmra.mxu3 %v1323_v29  ;;  %1747 = vmatmul.bf16.vlgmr.msra.gmra.mxu0 %v1323_v29 }
 0x511   :  { %1760 = vmatmul.bf16.vlgmr.msra.gmra.mxu1 %v1323_v29  ;;  %1773 = vmatmul.bf16.vlgmr.msra.gmra.mxu2 %v1323_v29 }
 0x520   :  { %1786 = vmatmul.bf16.vlgmr.msra.gmra.mxu3 %v1323_v29  ;;  %1799 = vmatmul.bf16.vlgmr.msrb.gmra.mxu0 %v1323_v29 }
 0x521   :  { %1812 = vmatmul.bf16.vlgmr.msrb.gmra.mxu1 %v1323_v29  ;;  %1825 = vmatmul.bf16.vlgmr.msrb.gmra.mxu2 %v1323_v29 }
 0x58d   :  { %v1748_v32 = vpop.f32.mrf.mxu0 }
 0x58e   :  { %v1761_v33 = vpop.f32.mrf.mxu1  ;;  %v1749_v39 = vadd.f32 %v1748_v32, %v1391_v34 }
 0x58f   :  { %v1762_v42 = vadd.f32 %v1761_v33, %v1392_v36 }
 0x593   :  { %v1735_v38 = vpop.f32.mrf.mxu3 }
 0x594   :  { %v1736_v40 = vadd.f32 %v1735_v38, %v1390_v35  ;;  %v1774_v41 = vpop.f32.mrf.mxu2 }
 0x595   :  { %v1775_v43 = vadd.f32 %v1774_v41, %v1393_v37  ;;  %v1750_v44 = vpop.f32.mrf.mxu0 }
 0x596   :  { %v1830_v45 = vpack.c.bf16 %v1749_v39, %v1736_v40  ;;  %v1763_v46 = vpop.f32.mrf.mxu1 }
 0x597   :  { %v1831_v47 = vpack.c.bf16 %v1775_v43, %v1762_v42 }
 0x598   :  { %1834 = vst [vmem:[%s3711_s20] sm:$0xff] %v1830_v45 }
 0x599   :  { %1835 = vst [vmem:[%s3711_s20 + $0x8] sm:$0xff] %v1831_v47 }
 0x59b   :  { %v1737_v48 = vpop.f32.mrf.mxu3 }
 0x59c   :  { %v1776_v49 = vpop.f32.mrf.mxu2 }
 0x59d   :  { %v1800_v50 = vpop.f32.mrf.mxu0 }
 0x59e   :  { %v1813_v51 = vpop.f32.mrf.mxu1  ;;  %v1801_v57 = vadd.f32 %v1800_v50, %v1395_v52 }
 0x59f   :  { %v1814_v60 = vadd.f32 %v1813_v51, %v1396_v54 }
 0x5a3   :  { %v1787_v56 = vpop.f32.mrf.mxu3 }
 0x5a4   :  { %v1788_v58 = vadd.f32 %v1787_v56, %v1394_v53  ;;  %v1826_v59 = vpop.f32.mrf.mxu2 }
 0x5a5   :  { %v1827_v61 = vadd.f32 %v1826_v59, %v1397_v55  ;;  %v1802_v62 = vpop.f32.mrf.mxu0 }
 0x5a6   :  { %v1832_v63 = vpack.c.bf16 %v1801_v57, %v1788_v58  ;;  %v1815_v0 = vpop.f32.mrf.mxu1 }
 0x5a7   :  { %v1833_v1 = vpack.c.bf16 %v1827_v61, %v1814_v60 }
 0x5a8   :  { %1836 = vst [vmem:[%s3711_s20 + $0x10] sm:$0xff] %v1832_v63 }
 0x5a9   :  { %1837 = vst [vmem:[%s3711_s20 + $0x18] sm:$0xff] %v1833_v1 }
 0x5ab   :  { %v1789_v2 = vpop.f32.mrf.mxu3 }
 0x5ac   :  { %v1828_v3 = vpop.f32.mrf.mxu2 }

</bundles_post_ra>
